<compile_context>
chip_gen: v7x
topology: tpu7x:2x2x1
jax: 0.10.0
libtpu: 0.0.40
codegen_flags: <defaults>
</compile_context>

<pallas_src>
from functools import partial

import jax
import jax.numpy as jnp
from jax import lax
from jax.experimental import pallas as pl
from jax.experimental.pallas import tpu as pltpu

EPS = 1e-5
_DN_SCATTER = (((0,), (0,)), ((), ()))  # contract over the node-tile axis: G^T @ h


def _round_up(v, m):
    return (v + m - 1) // m * m


def _tpu_defaults(max_hidden_p):
    """Generation-aware (tile_n, vmem_limit_bytes)."""
    tile_n, vmem = 512, 48 * 1024 * 1024          # safe on v7x (64 MiB VMEM / TC)
    if max_hidden_p >= 2048:
        tile_n = 256
    try:
        cap = getattr(pltpu.get_tpu_info(), "vmem_capacity_bytes", None)
    except Exception:
        cap = None
    if cap is not None and cap >= 96 * 1024 * 1024:   # v5e / v6e: 128 MiB physical VMEM
        tile_n, vmem = 1024, 96 * 1024 * 1024
    return tile_n, vmem


# ----------------------------------------------------------------------------- kernels

def _onehot_from_ids(ids_ref, ng):
    """[tile_n, NG] f32 one-hot built on the VPU from per-node graph ids (padded nodes: id=-1)."""
    ids = ids_ref[...]                                              # [tile_n, 1] int32
    gid = lax.broadcasted_iota(jnp.int32, (ids.shape[0], ng), 1)    # [tile_n, NG]
    return (ids == gid).astype(jnp.float32)


def _linear_stats_kernel(x_ref, ids_ref, w_ref, b_ref, h_ref, stats_ref):
    """h = x @ W + b; emit this tile's per-graph [sum(h), sum(h^2)] partials (f32)."""
    c = w_ref.shape[1]
    ng = stats_ref.shape[1]

    h = jnp.dot(x_ref[...], w_ref[...], preferred_element_type=jnp.float32) + b_ref[...]
    h_ref[...] = h.astype(h_ref.dtype)

    g = _onehot_from_ids(ids_ref, ng)                               # [tile_n, NG]
    stats_ref[0, :, :c] = lax.dot_general(
        g, h, dimension_numbers=_DN_SCATTER, preferred_element_type=jnp.float32)
    stats_ref[0, :, c:] = lax.dot_general(
        g, h * h, dimension_numbers=_DN_SCATTER, preferred_element_type=jnp.float32)


def _norm_linear_stats_kernel(h_ref, ids_ref, stats_in_ref, invc_ref, w_ref, b_ref,
                              o_ref, stats_out_ref):
    """InstanceNorm + ReLU, then Linear, then per-graph stats partials for the next norm."""
    c_in = h_ref.shape[1]
    c_out = w_ref.shape[1]
    ng = stats_in_ref.shape[0]

    # Finalize per-graph scale/shift from raw sums (tiny [NG, C] math, recomputed per tile).
    inv_cnt = invc_ref[...]                                          # [NG, 1]
    sums = stats_in_ref[...]                                         # [NG, 2*C_in]
    mean = sums[:, :c_in] * inv_cnt
    ex2 = sums[:, c_in:] * inv_cnt
    var = jnp.maximum(ex2 - mean * mean, 0.0)                        # biased variance
    inv_std = lax.rsqrt(var + EPS)                                   # [NG, C_in]

    g = _onehot_from_ids(ids_ref, ng)                                # [tile_n, NG]
    scale = jnp.dot(g, inv_std, preferred_element_type=jnp.float32)            # [tile_n, C_in]
    shift = jnp.dot(g, mean * inv_std, preferred_element_type=jnp.float32)     # [tile_n, C_in]

    h = h_ref[...].astype(jnp.float32)
    hn = jnp.maximum(h * scale - shift, 0.0)                         # InstanceNorm + ReLU
    # Dropout is identity at inference time.

    h2 = jnp.dot(hn.astype(jnp.bfloat16), w_ref[...],
                 preferred_element_type=jnp.float32) + b_ref[...]
    o_ref[...] = h2.astype(o_ref.dtype)

    stats_out_ref[0, :, :c_out] = lax.dot_general(
        g, h2, dimension_numbers=_DN_SCATTER, preferred_element_type=jnp.float32)
    stats_out_ref[0, :, c_out:] = lax.dot_general(
        g, h2 * h2, dimension_numbers=_DN_SCATTER, preferred_element_type=jnp.float32)


def _norm_linear_kernel(h_ref, ids_ref, stats_in_ref, invc_ref, w_ref, b_ref, o_ref):
    """InstanceNorm + ReLU, then the final Linear."""
    c_in = h_ref.shape[1]
    ng = stats_in_ref.shape[0]

    inv_cnt = invc_ref[...]
    sums = stats_in_ref[...]
    mean = sums[:, :c_in] * inv_cnt
    ex2 = sums[:, c_in:] * inv_cnt
    var = jnp.maximum(ex2 - mean * mean, 0.0)
    inv_std = lax.rsqrt(var + EPS)

    g = _onehot_from_ids(ids_ref, ng)
    scale = jnp.dot(g, inv_std, preferred_element_type=jnp.float32)
    shift = jnp.dot(g, mean * inv_std, preferred_element_type=jnp.float32)

    h = h_ref[...].astype(jnp.float32)
    hn = jnp.maximum(h * scale - shift, 0.0)

    out = jnp.dot(hn.astype(jnp.bfloat16), w_ref[...],
                  preferred_element_type=jnp.float32) + b_ref[...]
    o_ref[...] = out.astype(o_ref.dtype)


# ----------------------------------------------------------------------------- pallas_call wrappers

def _linear_stats_call(x, ids, w, b, ng_p, tile_n, vmem_limit):
    n_p, din = x.shape
    c = w.shape[1]
    nt = n_p // tile_n
    flops = 2 * n_p * din * c + 2 * 2 * n_p * ng_p * c
    bytes_acc = (2 * (x.size + w.size + n_p * c) + 4 * (ids.size + b.size + nt * ng_p * 2 * c))
    return pl.pallas_call(
        _linear_stats_kernel,
        out_shape=(jax.ShapeDtypeStruct((n_p, c), jnp.bfloat16),
                   jax.ShapeDtypeStruct((nt, ng_p, 2 * c), jnp.float32)),
        grid=(nt,),
        in_specs=[pl.BlockSpec((tile_n, din), lambda i: (i, 0)),
                  pl.BlockSpec((tile_n, 1), lambda i: (i, 0)),
                  pl.BlockSpec((din, c), lambda i: (0, 0)),
                  pl.BlockSpec((1, c), lambda i: (0, 0))],
        out_specs=(pl.BlockSpec((tile_n, c), lambda i: (i, 0)),
                   pl.BlockSpec((1, ng_p, 2 * c), lambda i: (i, 0, 0))),
        compiler_params=pltpu.CompilerParams(dimension_semantics=("parallel",),
                                             vmem_limit_bytes=vmem_limit),
        cost_estimate=pl.CostEstimate(flops=int(flops), transcendentals=0,
                                      bytes_accessed=int(bytes_acc)),
    )(x, ids, w, b)


def _norm_linear_stats_call(h_pre, ids, stats_in, inv_cnt, w, b, tile_n, vmem_limit):
    n_p, c_in = h_pre.shape
    ng_p = stats_in.shape[0]
    c_out = w.shape[1]
    nt = n_p // tile_n
    flops = (2 * 2 * n_p * ng_p * c_in          # gather scale/shift
             + 2 * n_p * c_in * c_out           # main matmul
             + 2 * 2 * n_p * ng_p * c_out)      # scatter stats
    bytes_acc = (2 * (h_pre.size + w.size + n_p * c_out)
                 + 4 * (ids.size + stats_in.size + inv_cnt.size + b.size + nt * ng_p * 2 * c_out))
    return pl.pallas_call(
        _norm_linear_stats_kernel,
        out_shape=(jax.ShapeDtypeStruct((n_p, c_out), jnp.bfloat16),
                   jax.ShapeDtypeStruct((nt, ng_p, 2 * c_out), jnp.float32)),
        grid=(nt,),
        in_specs=[pl.BlockSpec((tile_n, c_in), lambda i: (i, 0)),
                  pl.BlockSpec((tile_n, 1), lambda i: (i, 0)),
                  pl.BlockSpec((ng_p, 2 * c_in), lambda i: (0, 0)),
                  pl.BlockSpec((ng_p, 1), lambda i: (0, 0)),
                  pl.BlockSpec((c_in, c_out), lambda i: (0, 0)),
                  pl.BlockSpec((1, c_out), lambda i: (0, 0))],
        out_specs=(pl.BlockSpec((tile_n, c_out), lambda i: (i, 0)),
                   pl.BlockSpec((1, ng_p, 2 * c_out), lambda i: (i, 0, 0))),
        compiler_params=pltpu.CompilerParams(dimension_semantics=("parallel",),
                                             vmem_limit_bytes=vmem_limit),
        cost_estimate=pl.CostEstimate(flops=int(flops), transcendentals=int(nt * ng_p * c_in),
                                      bytes_accessed=int(bytes_acc)),
    )(h_pre, ids, stats_in, inv_cnt, w, b)


def _norm_linear_call(h_pre, ids, stats_in, inv_cnt, w, b, tile_n, vmem_limit):
    n_p, c_in = h_pre.shape
    ng_p = stats_in.shape[0]
    c_out = w.shape[1]
    nt = n_p // tile_n
    flops = 2 * 2 * n_p * ng_p * c_in + 2 * n_p * c_in * c_out
    bytes_acc = (2 * (h_pre.size + w.size + n_p * c_out)
                 + 4 * (ids.size + stats_in.size + inv_cnt.size + b.size))
    return pl.pallas_call(
        _norm_linear_kernel,
        out_shape=jax.ShapeDtypeStruct((n_p, c_out), jnp.bfloat16),
        grid=(nt,),
        in_specs=[pl.BlockSpec((tile_n, c_in), lambda i: (i, 0)),
                  pl.BlockSpec((tile_n, 1), lambda i: (i, 0)),
                  pl.BlockSpec((ng_p, 2 * c_in), lambda i: (0, 0)),
                  pl.BlockSpec((ng_p, 1), lambda i: (0, 0)),
                  pl.BlockSpec((c_in, c_out), lambda i: (0, 0)),
                  pl.BlockSpec((1, c_out), lambda i: (0, 0))],
        out_specs=pl.BlockSpec((tile_n, c_out), lambda i: (i, 0)),
        compiler_params=pltpu.CompilerParams(dimension_semantics=("parallel",),
                                             vmem_limit_bytes=vmem_limit),
        cost_estimate=pl.CostEstimate(flops=int(flops), transcendentals=int(nt * ng_p * c_in),
                                      bytes_accessed=int(bytes_acc)),
    )(h_pre, ids, stats_in, inv_cnt, w, b)


# ----------------------------------------------------------------------------- forward

@partial(jax.jit, static_argnums=(2,), static_argnames=("tile_n",))
def efmlp_forward(x, batch, num_graphs, params, *, tile_n=None):
    """x: [N, dim_node] float32, batch: [N] int32 graph ids in [0, num_graphs)."""
    w1, b1, w2, b2, w3, b3 = params
    n, din = x.shape
    h = w1.shape[1]
    h2 = w2.shape[1]

    # TPU-friendly padded shapes: lane-dense 128-padded channels, tile-aligned nodes,
    # sublane-aligned graph count.  The small layer-1 contraction dim (din) is NOT padded.
    h_p = _round_up(h, 128)
    h2_p = _round_up(h2, 128)
    ng_p = _round_up(num_graphs, 8)

    auto_tile, vmem_limit = _tpu_defaults(max(h_p, h2_p))
    if tile_n is None:
        tile_n = auto_tile
    n_r = _round_up(n, 128)
    tile = _round_up(min(tile_n, n_r), 128)
    n_p = _round_up(n, tile)

    def pad2(a, r, c):
        return jnp.pad(a, ((0, r - a.shape[0]), (0, c - a.shape[1])))

    x_p = pad2(x, n_p, din).astype(jnp.bfloat16)
    w1_p = pad2(w1, din, h_p).astype(jnp.bfloat16)
    b1_p = pad2(b1, 1, h_p).astype(jnp.float32)
    w2_p = pad2(w2, h_p, h2_p).astype(jnp.bfloat16)
    b2_p = pad2(b2, 1, h2_p).astype(jnp.float32)
    w3_p = pad2(w3, h2_p, h_p).astype(jnp.bfloat16)
    b3_p = pad2(b3, 1, h_p).astype(jnp.float32)

    # Per-node graph ids (padded nodes get -1 -> contribute to no graph, normalize to 0).
    ids = jnp.full((n_p, 1), -1, dtype=jnp.int32).at[:n, 0].set(batch.astype(jnp.int32))

    # Per-graph counts via scatter-add (no dense one-hot materialization).
    counts = jnp.zeros((ng_p,), jnp.float32).at[batch.astype(jnp.int32)].add(1.0)
    inv_cnt = (1.0 / jnp.maximum(counts, 1.0))[:, None]               # [NG_p, 1]

    # layer 1: linear + fused per-graph [sum(h), sum(h^2)] partials
    h1_pre, s1 = _linear_stats_call(x_p, ids, w1_p, b1_p, ng_p, tile, vmem_limit)
    stats1 = s1.sum(axis=0)                                           # [NG_p, 2*h_p]

    # layer 2: InstanceNorm+ReLU, linear, fused stats partials
    h2_pre, s2 = _norm_linear_stats_call(h1_pre, ids, stats1, inv_cnt, w2_p, b2_p,
                                         tile, vmem_limit)
    stats2 = s2.sum(axis=0)                                           # [NG_p, 2*h2_p]

    # layer 3: InstanceNorm+ReLU, final linear (bf16 HBM write)
    out_p = _norm_linear_call(h2_pre, ids, stats2, inv_cnt, w3_p, b3_p, tile, vmem_limit)
    return out_p[:n, :h].astype(jnp.float32)


# ----------------------------------------------------------------------------- params / reference

def init_params(key, dim_node, dim_hidden):
    """Deterministic Linear params (PyTorch-style uniform ranges), weights stored [in, out]."""
    def linear(k, fan_in, fan_out):
        kw, kb = jax.random.split(k)
        bound = 1.0 / jnp.sqrt(fan_in)
        w = jax.random.uniform(kw, (fan_in, fan_out), jnp.float32, -bound, bound)
        b = jax.random.uniform(kb, (1, fan_out), jnp.float32, -bound, bound)
        return w, b

    k1, k2, k3 = jax.random.split(key, 3)
    w1, b1 = linear(k1, dim_node, dim_hidden)
    w2, b2 = linear(k2, dim_hidden, 2 * dim_hidden)
    w3, b3 = linear(k3, 2 * dim_hidden, dim_hidden)
    return (w1, b1, w2, b2, w3, b3)


def _reference(x, batch, num_graphs, params):
    """Pure-JAX fp32 reference of the same forward (for sanity checking)."""
    w1, b1, w2, b2, w3, b3 = params

    def inorm_relu(h):
        g = (batch[None, :] == jnp.arange(num_graphs)[:, None]).astype(jnp.float32)
        cnt = jnp.clip(g.sum(1, keepdims=True), 1.0, None)
        mean = (g @ h) / cnt
        c = h - mean[batch]
        var = (g @ (c * c)) / cnt
        return jnp.maximum(c / jnp.sqrt(var + EPS)[batch], 0.0)

    h = inorm_relu(x @ w1 + b1)
    h = inorm_relu(h @ w2 + b2)
    return h @ w3 + b3


if __name__ == "__main__":
    key = jax.random.PRNGKey(0)
    k_x, k_p = jax.random.split(key)

    N, DIM_NODE, DIM_HIDDEN, NUM_GRAPHS = 16, 8, 32, 2

    x = jax.random.normal(k_x, (N, DIM_NODE), jnp.float32)
    # two graphs: first 10 nodes -> graph 0, last 6 nodes -> graph 1
    batch = jnp.concatenate([jnp.zeros((10,), jnp.int32), jnp.ones((6,), jnp.int32)])

    params = init_params(k_p, DIM_NODE, DIM_HIDDEN)

    out = efmlp_forward(x, batch, NUM_GRAPHS, params)
    out = jax.block_until_ready(out)

    ref = _reference(x, batch, NUM_GRAPHS, params)
    assert out.shape == (N, DIM_HIDDEN)
    # bf16 MXU operands / bf16 final store vs fp32 reference -> tolerate small numeric drift
    assert jnp.allclose(out, ref, atol=0.15, rtol=0.15)
    rel = jnp.linalg.norm(out - ref) / (jnp.linalg.norm(ref) + 1e-12)
    assert float(rel) < 0.07

    print("KERNEL_OK")
</pallas_src>

<mosaic_0001>
module attributes {stable_mosaic.version = 11 : i64} {
  func.func private @main(%arg0: i32) attributes {dimension_semantics = [#tpu.dimension_semantics<core_parallel>], iteration_bounds = array<i64: 2>, tpu.core_type = #tpu.core_type<sc_scalar_subcore>, window_params = []} {
    return
  }
}

module attributes {stable_mosaic.version = 11 : i64} {
  func.func private @main(%arg0: i32) attributes {dimension_semantics = [#tpu.dimension_semantics<core_parallel>], iteration_bounds = array<i64: 2>, tpu.core_type = #tpu.core_type<sc_scalar_subcore>, window_params = []} {
    return
  }
}

module attributes {stable_mosaic.version = 11 : i64} {
  func.func @_norm_linear_kernel(%arg0: i32, %arg1: memref<128x128xbf16, #tpu.memory_space<vmem>>, %arg2: memref<128x1xi32, #tpu.memory_space<vmem>>, %arg3: memref<8x256xf32, #tpu.memory_space<vmem>>, %arg4: memref<8x1xf32, #tpu.memory_space<vmem>>, %arg5: memref<128x128xbf16, #tpu.memory_space<vmem>>, %arg6: memref<1x128xf32, #tpu.memory_space<vmem>>, %arg7: memref<128x128xbf16, #tpu.memory_space<vmem>>) attributes {dimension_semantics = [#tpu.dimension_semantics<parallel>], iteration_bounds = array<i64: 1>, scalar_prefetch = 0 : i64, scratch_operands = 0 : i64, tpu.core_type = #tpu.core_type<tc>, window_params = [{transform_indices = @transform_0, window_bounds = array<i64: 128, 128>}, {transform_indices = @transform_1, window_bounds = array<i64: 128, 1>}, {pipeline_mode = #tpu.pipeline_mode<synchronous>, transform_indices = @transform_2, window_bounds = array<i64: 8, 256>}, {pipeline_mode = #tpu.pipeline_mode<synchronous>, transform_indices = @transform_3, window_bounds = array<i64: 8, 1>}, {pipeline_mode = #tpu.pipeline_mode<synchronous>, transform_indices = @transform_4, window_bounds = array<i64: 128, 128>}, {pipeline_mode = #tpu.pipeline_mode<synchronous>, transform_indices = @transform_5, window_bounds = array<i64: 1, 128>}, {transform_indices = @transform_6, window_bounds = array<i64: 128, 128>}]} {
    %c0 = arith.constant 0 : index
    %c0_0 = arith.constant 0 : index
    %0 = vector.load %arg4[%c0, %c0_0] : memref<8x1xf32, #tpu.memory_space<vmem>>, vector<8x1xf32>
    %c0_1 = arith.constant 0 : index
    %c0_2 = arith.constant 0 : index
    %1 = vector.load %arg3[%c0_1, %c0_2] : memref<8x256xf32, #tpu.memory_space<vmem>>, vector<8x256xf32>
    %2 = vector.extract_strided_slice %1 {offsets = [0, 0], sizes = [8, 128], strides = [1, 1]} : vector<8x256xf32> to vector<8x128xf32>
    %3 = vector.broadcast %0 : vector<8x1xf32> to vector<8x128xf32>
    %4 = arith.mulf %2, %3 : vector<8x128xf32>
    %5 = vector.extract_strided_slice %1 {offsets = [0, 128], sizes = [8, 128], strides = [1, 1]} : vector<8x256xf32> to vector<8x128xf32>
    %6 = vector.broadcast %0 : vector<8x1xf32> to vector<8x128xf32>
    %7 = arith.mulf %5, %6 : vector<8x128xf32>
    %8 = arith.mulf %4, %4 : vector<8x128xf32>
    %9 = arith.subf %7, %8 : vector<8x128xf32>
    %cst = arith.constant 0.000000e+00 : f32
    %10 = vector.broadcast %cst : f32 to vector<8x128xf32>
    %11 = arith.maximumf %9, %10 : vector<8x128xf32>
    %cst_3 = arith.constant 9.99999974E-6 : f32
    %12 = vector.broadcast %cst_3 : f32 to vector<8x128xf32>
    %13 = arith.addf %11, %12 : vector<8x128xf32>
    %14 = math.rsqrt %13 : vector<8x128xf32>
    %c0_4 = arith.constant 0 : index
    %c0_5 = arith.constant 0 : index
    %15 = vector.load %arg2[%c0_4, %c0_5] : memref<128x1xi32, #tpu.memory_space<vmem>>, vector<128x1xi32>
    %16 = tpu.iota {dimensions = array<i32: 1>} : vector<128x8xi32>
    %17 = vector.broadcast %15 : vector<128x1xi32> to vector<128x8xi32>
    %18 = arith.cmpi eq, %17, %16 : vector<128x8xi32>
    %19 = arith.extui %18 : vector<128x8xi1> to vector<128x8xi32>
    %20 = arith.sitofp %19 : vector<128x8xi32> to vector<128x8xf32>
    %cst_6 = arith.constant dense<0.000000e+00> : vector<128x128xf32>
    %21 = tpu.matmul %20, %14, %cst_6 {dimension_numbers = #tpu.dot_dimension_numbers<[1], [0], [0], [1], [0, 0, 1, 1], [], []>} : vector<128x8xf32>, vector<8x128xf32>, vector<128x128xf32> -> vector<128x128xf32>
    %22 = arith.mulf %4, %14 : vector<8x128xf32>
    %cst_7 = arith.constant dense<0.000000e+00> : vector<128x128xf32>
    %23 = tpu.matmul %20, %22, %cst_7 {dimension_numbers = #tpu.dot_dimension_numbers<[1], [0], [0], [1], [0, 0, 1, 1], [], []>} : vector<128x8xf32>, vector<8x128xf32>, vector<128x128xf32> -> vector<128x128xf32>
    %c0_8 = arith.constant 0 : index
    %c0_9 = arith.constant 0 : index
    %24 = vector.load %arg1[%c0_8, %c0_9] : memref<128x128xbf16, #tpu.memory_space<vmem>>, vector<128x128xbf16>
    %25 = arith.extf %24 : vector<128x128xbf16> to vector<128x128xf32>
    %26 = arith.mulf %25, %21 : vector<128x128xf32>
    %27 = arith.subf %26, %23 : vector<128x128xf32>
    %cst_10 = arith.constant 0.000000e+00 : f32
    %28 = vector.broadcast %cst_10 : f32 to vector<128x128xf32>
    %29 = arith.maximumf %27, %28 : vector<128x128xf32>
    %30 = arith.truncf %29 : vector<128x128xf32> to vector<128x128xbf16>
    %c0_11 = arith.constant 0 : index
    %c0_12 = arith.constant 0 : index
    %31 = vector.load %arg5[%c0_11, %c0_12] : memref<128x128xbf16, #tpu.memory_space<vmem>>, vector<128x128xbf16>
    %cst_13 = arith.constant dense<0.000000e+00> : vector<128x128xf32>
    %32 = tpu.matmul %30, %31, %cst_13 {dimension_numbers = #tpu.dot_dimension_numbers<[1], [0], [0], [1], [0, 0, 1, 1], [], []>} : vector<128x128xbf16>, vector<128x128xbf16>, vector<128x128xf32> -> vector<128x128xf32>
    %c0_14 = arith.constant 0 : index
    %c0_15 = arith.constant 0 : index
    %33 = vector.load %arg6[%c0_14, %c0_15] : memref<1x128xf32, #tpu.memory_space<vmem>>, vector<1x128xf32>
    %34 = vector.broadcast %33 : vector<1x128xf32> to vector<128x128xf32>
    %35 = arith.addf %32, %34 : vector<128x128xf32>
    %36 = arith.truncf %35 : vector<128x128xf32> to vector<128x128xbf16>
    %c0_16 = arith.constant 0 : index
    %c0_17 = arith.constant 0 : index
    %37 = vector.load %arg7[%c0_16, %c0_17] : memref<128x128xbf16, #tpu.memory_space<vmem>>, vector<128x128xbf16>
    tpu.vector_store %arg7[%c0_16, %c0_17], %36 {strides = array<i32>} : memref<128x128xbf16, #tpu.memory_space<vmem>>, vector<128x128xbf16>,
    return
  }
  func.func @transform_0(%arg0: i32) -> (i32, i32) {
    %c0_i32 = arith.constant 0 : i32
    %c0_i32_0 = arith.constant 0 : i32
    return %arg0, %c0_i32 : i32, i32
  }
  func.func @transform_1(%arg0: i32) -> (i32, i32) {
    %c0_i32 = arith.constant 0 : i32
    %c0_i32_0 = arith.constant 0 : i32
    return %arg0, %c0_i32 : i32, i32
  }
  func.func @transform_2(%arg0: i32) -> (i32, i32) {
    %c0_i32 = arith.constant 0 : i32
    %c0_i32_0 = arith.constant 0 : i32
    %c0_i32_1 = arith.constant 0 : i32
    return %c0_i32, %c0_i32_0 : i32, i32
  }
  func.func @transform_3(%arg0: i32) -> (i32, i32) {
    %c0_i32 = arith.constant 0 : i32
    %c0_i32_0 = arith.constant 0 : i32
    %c0_i32_1 = arith.constant 0 : i32
    return %c0_i32, %c0_i32_0 : i32, i32
  }
  func.func @transform_4(%arg0: i32) -> (i32, i32) {
    %c0_i32 = arith.constant 0 : i32
    %c0_i32_0 = arith.constant 0 : i32
    %c0_i32_1 = arith.constant 0 : i32
    return %c0_i32, %c0_i32_0 : i32, i32
  }
  func.func @transform_5(%arg0: i32) -> (i32, i32) {
    %c0_i32 = arith.constant 0 : i32
    %c0_i32_0 = arith.constant 0 : i32
    %c0_i32_1 = arith.constant 0 : i32
    return %c0_i32, %c0_i32_0 : i32, i32
  }
  func.func @transform_6(%arg0: i32) -> (i32, i32) {
    %c0_i32 = arith.constant 0 : i32
    %c0_i32_0 = arith.constant 0 : i32
    return %arg0, %c0_i32 : i32, i32
  }
}

module attributes {stable_mosaic.version = 11 : i64} {
  func.func @_norm_linear_stats_kernel(%arg0: i32, %arg1: memref<128x128xbf16, #tpu.memory_space<vmem>>, %arg2: memref<128x1xi32, #tpu.memory_space<vmem>>, %arg3: memref<8x256xf32, #tpu.memory_space<vmem>>, %arg4: memref<8x1xf32, #tpu.memory_space<vmem>>, %arg5: memref<128x128xbf16, #tpu.memory_space<vmem>>, %arg6: memref<1x128xf32, #tpu.memory_space<vmem>>, %arg7: memref<128x128xbf16, #tpu.memory_space<vmem>>, %arg8: memref<1x8x256xf32, #tpu.memory_space<vmem>>) attributes {dimension_semantics = [#tpu.dimension_semantics<parallel>], iteration_bounds = array<i64: 1>, scalar_prefetch = 0 : i64, scratch_operands = 0 : i64, tpu.core_type = #tpu.core_type<tc>, window_params = [{transform_indices = @transform_0, window_bounds = array<i64: 128, 128>}, {transform_indices = @transform_1, window_bounds = array<i64: 128, 1>}, {pipeline_mode = #tpu.pipeline_mode<synchronous>, transform_indices = @transform_2, window_bounds = array<i64: 8, 256>}, {pipeline_mode = #tpu.pipeline_mode<synchronous>, transform_indices = @transform_3, window_bounds = array<i64: 8, 1>}, {pipeline_mode = #tpu.pipeline_mode<synchronous>, transform_indices = @transform_4, window_bounds = array<i64: 128, 128>}, {pipeline_mode = #tpu.pipeline_mode<synchronous>, transform_indices = @transform_5, window_bounds = array<i64: 1, 128>}, {transform_indices = @transform_6, window_bounds = array<i64: 128, 128>}, {transform_indices = @transform_7, window_bounds = array<i64: 1, 8, 256>}]} {
    %c0 = arith.constant 0 : index
    %c0_0 = arith.constant 0 : index
    %0 = vector.load %arg4[%c0, %c0_0] : memref<8x1xf32, #tpu.memory_space<vmem>>, vector<8x1xf32>
    %c0_1 = arith.constant 0 : index
    %c0_2 = arith.constant 0 : index
    %1 = vector.load %arg3[%c0_1, %c0_2] : memref<8x256xf32, #tpu.memory_space<vmem>>, vector<8x256xf32>
    %2 = vector.extract_strided_slice %1 {offsets = [0, 0], sizes = [8, 128], strides = [1, 1]} : vector<8x256xf32> to vector<8x128xf32>
    %3 = vector.broadcast %0 : vector<8x1xf32> to vector<8x128xf32>
    %4 = arith.mulf %2, %3 : vector<8x128xf32>
    %5 = vector.extract_strided_slice %1 {offsets = [0, 128], sizes = [8, 128], strides = [1, 1]} : vector<8x256xf32> to vector<8x128xf32>
    %6 = vector.broadcast %0 : vector<8x1xf32> to vector<8x128xf32>
    %7 = arith.mulf %5, %6 : vector<8x128xf32>
    %8 = arith.mulf %4, %4 : vector<8x128xf32>
    %9 = arith.subf %7, %8 : vector<8x128xf32>
    %cst = arith.constant 0.000000e+00 : f32
    %10 = vector.broadcast %cst : f32 to vector<8x128xf32>
    %11 = arith.maximumf %9, %10 : vector<8x128xf32>
    %cst_3 = arith.constant 9.99999974E-6 : f32
    %12 = vector.broadcast %cst_3 : f32 to vector<8x128xf32>
    %13 = arith.addf %11, %12 : vector<8x128xf32>
    %14 = math.rsqrt %13 : vector<8x128xf32>
    %c0_4 = arith.constant 0 : index
    %c0_5 = arith.constant 0 : index
    %15 = vector.load %arg2[%c0_4, %c0_5] : memref<128x1xi32, #tpu.memory_space<vmem>>, vector<128x1xi32>
    %16 = tpu.iota {dimensions = array<i32: 1>} : vector<128x8xi32>
    %17 = vector.broadcast %15 : vector<128x1xi32> to vector<128x8xi32>
    %18 = arith.cmpi eq, %17, %16 : vector<128x8xi32>
    %19 = arith.extui %18 : vector<128x8xi1> to vector<128x8xi32>
    %20 = arith.sitofp %19 : vector<128x8xi32> to vector<128x8xf32>
    %cst_6 = arith.constant dense<0.000000e+00> : vector<128x128xf32>
    %21 = tpu.matmul %20, %14, %cst_6 {dimension_numbers = #tpu.dot_dimension_numbers<[1], [0], [0], [1], [0, 0, 1, 1], [], []>} : vector<128x8xf32>, vector<8x128xf32>, vector<128x128xf32> -> vector<128x128xf32>
    %22 = arith.mulf %4, %14 : vector<8x128xf32>
    %cst_7 = arith.constant dense<0.000000e+00> : vector<128x128xf32>
    %23 = tpu.matmul %20, %22, %cst_7 {dimension_numbers = #tpu.dot_dimension_numbers<[1], [0], [0], [1], [0, 0, 1, 1], [], []>} : vector<128x8xf32>, vector<8x128xf32>, vector<128x128xf32> -> vector<128x128xf32>
    %c0_8 = arith.constant 0 : index
    %c0_9 = arith.constant 0 : index
    %24 = vector.load %arg1[%c0_8, %c0_9] : memref<128x128xbf16, #tpu.memory_space<vmem>>, vector<128x128xbf16>
    %25 = arith.extf %24 : vector<128x128xbf16> to vector<128x128xf32>
    %26 = arith.mulf %25, %21 : vector<128x128xf32>
    %27 = arith.subf %26, %23 : vector<128x128xf32>
    %cst_10 = arith.constant 0.000000e+00 : f32
    %28 = vector.broadcast %cst_10 : f32 to vector<128x128xf32>
    %29 = arith.maximumf %27, %28 : vector<128x128xf32>
    %30 = arith.truncf %29 : vector<128x128xf32> to vector<128x128xbf16>
    %c0_11 = arith.constant 0 : index
    %c0_12 = arith.constant 0 : index
    %31 = vector.load %arg5[%c0_11, %c0_12] : memref<128x128xbf16, #tpu.memory_space<vmem>>, vector<128x128xbf16>
    %cst_13 = arith.constant dense<0.000000e+00> : vector<128x128xf32>
    %32 = tpu.matmul %30, %31, %cst_13 {dimension_numbers = #tpu.dot_dimension_numbers<[1], [0], [0], [1], [0, 0, 1, 1], [], []>} : vector<128x128xbf16>, vector<128x128xbf16>, vector<128x128xf32> -> vector<128x128xf32>
    %c0_14 = arith.constant 0 : index
    %c0_15 = arith.constant 0 : index
    %33 = vector.load %arg6[%c0_14, %c0_15] : memref<1x128xf32, #tpu.memory_space<vmem>>, vector<1x128xf32>
    %34 = vector.broadcast %33 : vector<1x128xf32> to vector<128x128xf32>
    %35 = arith.addf %32, %34 : vector<128x128xf32>
    %36 = arith.truncf %35 : vector<128x128xf32> to vector<128x128xbf16>
    %c0_16 = arith.constant 0 : index
    %c0_17 = arith.constant 0 : index
    %37 = vector.load %arg7[%c0_16, %c0_17] : memref<128x128xbf16, #tpu.memory_space<vmem>>, vector<128x128xbf16>
    tpu.vector_store %arg7[%c0_16, %c0_17], %36 {strides = array<i32>} : memref<128x128xbf16, #tpu.memory_space<vmem>>, vector<128x128xbf16>,
    %cst_18 = arith.constant dense<0.000000e+00> : vector<8x128xf32>
    %38 = tpu.matmul %20, %35, %cst_18 {dimension_numbers = #tpu.dot_dimension_numbers<[0], [0], [1], [1], [0, 1, 1, 1], [], []>} : vector<128x8xf32>, vector<128x128xf32>, vector<8x128xf32> -> vector<8x128xf32>
    %c0_19 = arith.constant 0 : index
    %c0_20 = arith.constant 0 : index
    %c0_21 = arith.constant 0 : index
    %39 = vector.load %arg8[%c0_19, %c0_20, %c0_21] : memref<1x8x256xf32, #tpu.memory_space<vmem>>, vector<1x8x128xf32>
    %40 = vector.shape_cast %39 : vector<1x8x128xf32> to vector<8x128xf32>
    %41 = vector.shape_cast %38 : vector<8x128xf32> to vector<1x8x128xf32>
    tpu.vector_store %arg8[%c0_19, %c0_20, %c0_21], %41 {strides = array<i32>} : memref<1x8x256xf32, #tpu.memory_space<vmem>>, vector<1x8x128xf32>,
    %42 = arith.mulf %35, %35 : vector<128x128xf32>
    %cst_22 = arith.constant dense<0.000000e+00> : vector<8x128xf32>
    %43 = tpu.matmul %20, %42, %cst_22 {dimension_numbers = #tpu.dot_dimension_numbers<[0], [0], [1], [1], [0, 1, 1, 1], [], []>} : vector<128x8xf32>, vector<128x128xf32>, vector<8x128xf32> -> vector<8x128xf32>
    %c0_23 = arith.constant 0 : index
    %c0_24 = arith.constant 0 : index
    %c128 = arith.constant 128 : index
    %44 = vector.load %arg8[%c0_23, %c0_24, %c128] : memref<1x8x256xf32, #tpu.memory_space<vmem>>, vector<1x8x128xf32>
    %45 = vector.shape_cast %44 : vector<1x8x128xf32> to vector<8x128xf32>
    %46 = vector.shape_cast %43 : vector<8x128xf32> to vector<1x8x128xf32>
    tpu.vector_store %arg8[%c0_23, %c0_24, %c128], %46 {strides = array<i32>} : memref<1x8x256xf32, #tpu.memory_space<vmem>>, vector<1x8x128xf32>,
    return
  }
  func.func @transform_0(%arg0: i32) -> (i32, i32) {
    %c0_i32 = arith.constant 0 : i32
    %c0_i32_0 = arith.constant 0 : i32
    return %arg0, %c0_i32 : i32, i32
  }
  func.func @transform_1(%arg0: i32) -> (i32, i32) {
    %c0_i32 = arith.constant 0 : i32
    %c0_i32_0 = arith.constant 0 : i32
    return %arg0, %c0_i32 : i32, i32
  }
  func.func @transform_2(%arg0: i32) -> (i32, i32) {
    %c0_i32 = arith.constant 0 : i32
    %c0_i32_0 = arith.constant 0 : i32
    %c0_i32_1 = arith.constant 0 : i32
    return %c0_i32, %c0_i32_0 : i32, i32
  }
  func.func @transform_3(%arg0: i32) -> (i32, i32) {
    %c0_i32 = arith.constant 0 : i32
    %c0_i32_0 = arith.constant 0 : i32
    %c0_i32_1 = arith.constant 0 : i32
    return %c0_i32, %c0_i32_0 : i32, i32
  }
  func.func @transform_4(%arg0: i32) -> (i32, i32) {
    %c0_i32 = arith.constant 0 : i32
    %c0_i32_0 = arith.constant 0 : i32
    %c0_i32_1 = arith.constant 0 : i32
    return %c0_i32, %c0_i32_0 : i32, i32
  }
  func.func @transform_5(%arg0: i32) -> (i32, i32) {
    %c0_i32 = arith.constant 0 : i32
    %c0_i32_0 = arith.constant 0 : i32
    %c0_i32_1 = arith.constant 0 : i32
    return %c0_i32, %c0_i32_0 : i32, i32
  }
  func.func @transform_6(%arg0: i32) -> (i32, i32) {
    %c0_i32 = arith.constant 0 : i32
    %c0_i32_0 = arith.constant 0 : i32
    return %arg0, %c0_i32 : i32, i32
  }
  func.func @transform_7(%arg0: i32) -> (i32, i32, i32) {
    %c0_i32 = arith.constant 0 : i32
    %c0_i32_0 = arith.constant 0 : i32
    %c0_i32_1 = arith.constant 0 : i32
    return %arg0, %c0_i32, %c0_i32_0 : i32, i32, i32
  }
}

module attributes {stable_mosaic.version = 11 : i64} {
  func.func @_linear_stats_kernel(%arg0: i32, %arg1: memref<128x8xbf16, #tpu.memory_space<vmem>>, %arg2: memref<128x1xi32, #tpu.memory_space<vmem>>, %arg3: memref<8x128xbf16, #tpu.memory_space<vmem>>, %arg4: memref<1x128xf32, #tpu.memory_space<vmem>>, %arg5: memref<128x128xbf16, #tpu.memory_space<vmem>>, %arg6: memref<1x8x256xf32, #tpu.memory_space<vmem>>) attributes {dimension_semantics = [#tpu.dimension_semantics<parallel>], iteration_bounds = array<i64: 1>, scalar_prefetch = 0 : i64, scratch_operands = 0 : i64, tpu.core_type = #tpu.core_type<tc>, window_params = [{transform_indices = @transform_0, window_bounds = array<i64: 128, 8>}, {transform_indices = @transform_1, window_bounds = array<i64: 128, 1>}, {pipeline_mode = #tpu.pipeline_mode<synchronous>, transform_indices = @transform_2, window_bounds = array<i64: 8, 128>}, {pipeline_mode = #tpu.pipeline_mode<synchronous>, transform_indices = @transform_3, window_bounds = array<i64: 1, 128>}, {transform_indices = @transform_4, window_bounds = array<i64: 128, 128>}, {transform_indices = @transform_5, window_bounds = array<i64: 1, 8, 256>}]} {
    %c0 = arith.constant 0 : index
    %c0_0 = arith.constant 0 : index
    %0 = vector.load %arg1[%c0, %c0_0] : memref<128x8xbf16, #tpu.memory_space<vmem>>, vector<128x8xbf16>
    %c0_1 = arith.constant 0 : index
    %c0_2 = arith.constant 0 : index
    %1 = vector.load %arg3[%c0_1, %c0_2] : memref<8x128xbf16, #tpu.memory_space<vmem>>, vector<8x128xbf16>
    %cst = arith.constant dense<0.000000e+00> : vector<128x128xf32>
    %2 = tpu.matmul %0, %1, %cst {dimension_numbers = #tpu.dot_dimension_numbers<[1], [0], [0], [1], [0, 0, 1, 1], [], []>} : vector<128x8xbf16>, vector<8x128xbf16>, vector<128x128xf32> -> vector<128x128xf32>
    %c0_3 = arith.constant 0 : index
    %c0_4 = arith.constant 0 : index
    %3 = vector.load %arg4[%c0_3, %c0_4] : memref<1x128xf32, #tpu.memory_space<vmem>>, vector<1x128xf32>
    %4 = vector.broadcast %3 : vector<1x128xf32> to vector<128x128xf32>
    %5 = arith.addf %2, %4 : vector<128x128xf32>
    %6 = arith.truncf %5 : vector<128x128xf32> to vector<128x128xbf16>
    %c0_5 = arith.constant 0 : index
    %c0_6 = arith.constant 0 : index
    %7 = vector.load %arg5[%c0_5, %c0_6] : memref<128x128xbf16, #tpu.memory_space<vmem>>, vector<128x128xbf16>
    tpu.vector_store %arg5[%c0_5, %c0_6], %6 {strides = array<i32>} : memref<128x128xbf16, #tpu.memory_space<vmem>>, vector<128x128xbf16>,
    %c0_7 = arith.constant 0 : index
    %c0_8 = arith.constant 0 : index
    %8 = vector.load %arg2[%c0_7, %c0_8] : memref<128x1xi32, #tpu.memory_space<vmem>>, vector<128x1xi32>
    %9 = tpu.iota {dimensions = array<i32: 1>} : vector<128x8xi32>
    %10 = vector.broadcast %8 : vector<128x1xi32> to vector<128x8xi32>
    %11 = arith.cmpi eq, %10, %9 : vector<128x8xi32>
    %12 = arith.extui %11 : vector<128x8xi1> to vector<128x8xi32>
    %13 = arith.sitofp %12 : vector<128x8xi32> to vector<128x8xf32>
    %cst_9 = arith.constant dense<0.000000e+00> : vector<8x128xf32>
    %14 = tpu.matmul %13, %5, %cst_9 {dimension_numbers = #tpu.dot_dimension_numbers<[0], [0], [1], [1], [0, 1, 1, 1], [], []>} : vector<128x8xf32>, vector<128x128xf32>, vector<8x128xf32> -> vector<8x128xf32>
    %c0_10 = arith.constant 0 : index
    %c0_11 = arith.constant 0 : index
    %c0_12 = arith.constant 0 : index
    %15 = vector.load %arg6[%c0_10, %c0_11, %c0_12] : memref<1x8x256xf32, #tpu.memory_space<vmem>>, vector<1x8x128xf32>
    %16 = vector.shape_cast %15 : vector<1x8x128xf32> to vector<8x128xf32>
    %17 = vector.shape_cast %14 : vector<8x128xf32> to vector<1x8x128xf32>
    tpu.vector_store %arg6[%c0_10, %c0_11, %c0_12], %17 {strides = array<i32>} : memref<1x8x256xf32, #tpu.memory_space<vmem>>, vector<1x8x128xf32>,
    %18 = arith.mulf %5, %5 : vector<128x128xf32>
    %cst_13 = arith.constant dense<0.000000e+00> : vector<8x128xf32>
    %19 = tpu.matmul %13, %18, %cst_13 {dimension_numbers = #tpu.dot_dimension_numbers<[0], [0], [1], [1], [0, 1, 1, 1], [], []>} : vector<128x8xf32>, vector<128x128xf32>, vector<8x128xf32> -> vector<8x128xf32>
    %c0_14 = arith.constant 0 : index
    %c0_15 = arith.constant 0 : index
    %c128 = arith.constant 128 : index
    %20 = vector.load %arg6[%c0_14, %c0_15, %c128] : memref<1x8x256xf32, #tpu.memory_space<vmem>>, vector<1x8x128xf32>
    %21 = vector.shape_cast %20 : vector<1x8x128xf32> to vector<8x128xf32>
    %22 = vector.shape_cast %19 : vector<8x128xf32> to vector<1x8x128xf32>
    tpu.vector_store %arg6[%c0_14, %c0_15, %c128], %22 {strides = array<i32>} : memref<1x8x256xf32, #tpu.memory_space<vmem>>, vector<1x8x128xf32>,
    return
  }
  func.func @transform_0(%arg0: i32) -> (i32, i32) {
    %c0_i32 = arith.constant 0 : i32
    %c0_i32_0 = arith.constant 0 : i32
    return %arg0, %c0_i32 : i32, i32
  }
  func.func @transform_1(%arg0: i32) -> (i32, i32) {
    %c0_i32 = arith.constant 0 : i32
    %c0_i32_0 = arith.constant 0 : i32
    return %arg0, %c0_i32 : i32, i32
  }
  func.func @transform_2(%arg0: i32) -> (i32, i32) {
    %c0_i32 = arith.constant 0 : i32
    %c0_i32_0 = arith.constant 0 : i32
    %c0_i32_1 = arith.constant 0 : i32
    return %c0_i32, %c0_i32_0 : i32, i32
  }
  func.func @transform_3(%arg0: i32) -> (i32, i32) {
    %c0_i32 = arith.constant 0 : i32
    %c0_i32_0 = arith.constant 0 : i32
    %c0_i32_1 = arith.constant 0 : i32
    return %c0_i32, %c0_i32_0 : i32, i32
  }
  func.func @transform_4(%arg0: i32) -> (i32, i32) {
    %c0_i32 = arith.constant 0 : i32
    %c0_i32_0 = arith.constant 0 : i32
    return %arg0, %c0_i32 : i32, i32
  }
  func.func @transform_5(%arg0: i32) -> (i32, i32, i32) {
    %c0_i32 = arith.constant 0 : i32
    %c0_i32_0 = arith.constant 0 : i32
    %c0_i32_1 = arith.constant 0 : i32
    return %arg0, %c0_i32, %c0_i32_0 : i32, i32, i32
  }
}

</mosaic_0001>

<bundles_post_ra>
// kernel: efmlp_forward.3
= control target key start
LH: loop header
LB: loop body
LE: loop exit
PB: predicated region body
PF: predicated region fallthrough
CT: control target
= control target key end

     0   :  { %vm109_vm0 = vcmask 1043456   ;;  %v908_v0 = vmov 0   ;;  %vm84_vm1 = vcmask 64512   ;;  %v909_v27 = vmov 0.0|0.0   ;;  %s1128_s2 = inlined_call_operand.vmem [shape: bf16[8,128], index: 2, kind: input, shape index: {}]   ;;  %s1129_s1 = inlined_call_operand.vmem [shape: s32[128,1], index: 1, kind: input, shape index: {}]   ;;  %s1130_s0 = inlined_call_operand.vmem [shape: bf16[128,8], index: 0, kind: input, shape index: {}]   ;;  %s1131_s3 = inlined_call_operand.vmem [shape: f32[1,128], index: 3, kind: input, shape index: {}]   ;;  %s1132_s4 = inlined_call_operand.vmem [shape: bf16[128,128], index: 4, kind: output, shape index: {0}]   ;;  %s1133_s5 = inlined_call_operand.vmem [shape: f32[1,8,256], index: 5, kind: output, shape index: {1}]  }
   0x1   :  { %899 = vset.pattern.permute.xlu1 %v908_v0  ;;  %898 = vset.pattern.permute.xlu0 %v908_v0  ;;  %v36_v1 = vld [vmem:[%s1128_s2] sm:$0xf]  ;;  %v292_v2 = vld [vmem:[%s1129_s1 + $0x10] sm:$0xff]  ;;  %v293_v6 = vld [vmem:[%s1129_s1 + $0x18] sm:$0xff]  ;;  %v306_v28 = vlaneseq  ;;  %vm910_vm2 = vmmov 0   ;;  %v911_v30 = vmov 0.0  }
   0x2   :  { %v290_v3 = vld [vmem:[%s1129_s1] sm:$0xff]  ;;  %893 = vmatprep.subr.msk.bf16.mxu0 %vm109_vm0, %v36_v1  ;;  %315 = vperm.xlu1 %899, %v292_v2   ;;  %v111_v4 = vsel %vm109_vm0, %v36_v1, 0  ;;  %v291_v7 = vld [vmem:[%s1129_s1 + $0x8] sm:$0xff]  ;;  %v902_v9 = vld [vmem:[%s1130_s0 + $0x10] sm:$0xff]  }
   0x3   :  { %v900_v5 = vld [vmem:[%s1130_s0] sm:$0xff]   ;;  %309 = vperm.xlu0 %898, %v290_v3   ;;  %758 = vmatpush3.bf16.msra.mxu0 %v111_v4  ;;  %v901_v8 = vld [vmem:[%s1130_s0 + $0x8] sm:$0xff]   ;;  %v903_v12 = vld [vmem:[%s1130_s0 + $0x18] sm:$0xff]   ;;  %v1027_v29 = vand.u32 127, %v306_v28 }
   0x4   :  { %759 = vmatprep.mubr.msk.bf16.mxu0 %vm84_vm1, %v900_v5  ;;  %v295_v10 = vld [vmem:[%s1129_s1 + $0x28] sm:$0xff]  ;;  %v294_v11 = vld [vmem:[%s1129_s1 + $0x20] sm:$0xff]  ;;  %v297_v13 = vld [vmem:[%s1129_s1 + $0x38] sm:$0xff]  ;;  %845 = vmatprep.subr.bf16.mxu1 %v909_v27 }
   0x5   :  { %v904_v14 = vld [vmem:[%s1130_s0 + $0x20] sm:$0xff]   ;;  %v296_v15 = vld [vmem:[%s1129_s1 + $0x30] sm:$0xff]  ;;  %v299_v16 = vld [vmem:[%s1129_s1 + $0x48] sm:$0xff]  ;;  %869 = vmatprep.subr.bf16.mxu0 %v909_v27  ;;  %807 = vmatprep.mubr.msk.f32.mxu1 %vm910_vm2, %v911_v30 }
   0x6   :  { %318 = vperm.xlu1 %899, %v293_v6   ;;  %760 = vmatmul.mubr.msk.bf16.vlgmr.msra.gmra.mrb[0].mxu0 %vm84_vm1, %v901_v8  ;;  %v298_v17 = vld [vmem:[%s1129_s1 + $0x40] sm:$0xff]  ;;  %v905_v18 = vld [vmem:[%s1130_s0 + $0x28] sm:$0xff]   ;;  %v301_v19 = vld [vmem:[%s1129_s1 + $0x58] sm:$0xff] }
   0x7   :  { %312 = vperm.xlu0 %898, %v291_v7   ;;  %763 = vmatprep.mubr.msk.bf16.mxu0 %vm84_vm1, %v902_v9  ;;  %v906_v20 = vld [vmem:[%s1130_s0 + $0x30] sm:$0xff]   ;;  %v303_v22 = vld [vmem:[%s1129_s1 + $0x68] sm:$0xff]  ;;  %v302_v23 = vld [vmem:[%s1129_s1 + $0x60] sm:$0xff] }
   0x8   :  { %v300_v21 = vld [vmem:[%s1129_s1 + $0x50] sm:$0xff]  ;;  %v907_v24 = vld [vmem:[%s1130_s0 + $0x38] sm:$0xff]   ;;  %v1066_v63 = vld [vmem:[%s1131_s3] ss:$0 sm:$0xff] }
   0x9   :  { %v305_v25 = vld [vmem:[%s1129_s1 + $0x78] sm:$0xff]  ;;  %v304_v26 = vld [vmem:[%s1129_s1 + $0x70] sm:$0xff] }
   0xa   :  { %324 = vperm.xlu1 %899, %v295_v10  }
   0xb   :  { %321 = vperm.xlu0 %898, %v294_v11  }
   0xe   :  { %330 = vperm.xlu1 %899, %v297_v13   ;;  %764 = vmatmul.mubr.msk.bf16.gmra.mrb[4].mxu0 %vm84_vm1, %v903_v12 }
   0xf   :  { %327 = vperm.xlu0 %898, %v296_v15   ;;  %767 = vmatprep.mubr.msk.bf16.mxu0 %vm84_vm1, %v904_v14 }
  0x12   :  { %336 = vperm.xlu1 %899, %v299_v16  }
  0x13   :  { %333 = vperm.xlu0 %898, %v298_v17  }
  0x16   :  { %342 = vperm.xlu1 %899, %v301_v19   ;;  %768 = vmatmul.mubr.msk.bf16.gmra.mrb[8].mxu0 %vm84_vm1, %v905_v18 }
  0x17   :  { %339 = vperm.xlu0 %898, %v300_v21   ;;  %771 = vmatprep.mubr.msk.bf16.mxu0 %vm84_vm1, %v906_v20 }
  0x1a   :  { %348 = vperm.xlu1 %899, %v303_v22  }
  0x1b   :  { %345 = vperm.xlu0 %898, %v302_v23  }
  0x1e   :  { %354 = vperm.xlu1 %899, %v305_v25   ;;  %772 = vmatmul.mubr.msk.bf16.gmra.mrb[12].mxu0 %vm84_vm1, %v907_v24 }
  0x1f   :  { %351 = vperm.xlu0 %898, %v304_v26   ;;  %842 = vmatprep.mubr.msk.f32.mxu0 %vm910_vm2, %v911_v30 }
  0x81   :  { %v316_v33 = vpop.permute.xlu1 %315 }
  0x82   :  { %v310_v31 = vpop.permute.xlu0 %309  ;;  %vm358_vm4 = vcmp.eq.s32.totalorder %v316_v33, %v1027_v29 }
  0x83   :  { %vm356_vm3 = vcmp.eq.s32.totalorder %v310_v31, %v1027_v29  ;;  %v637_v36 = vsel %vm358_vm4, 1.0, %v911_v30 }
  0x84   :  { %v635_v32 = vsel %vm356_vm3, 1.0, %v911_v30 }
  0x85   :  { %404 = vxpose.xlu0.b32.start [1/16] (narrow) %v635_v32, 8  ;;  %v319_v37 = vpop.permute.xlu1 %318 }
  0x86   :  { %v313_v34 = vpop.permute.xlu0 %312  ;;  %vm359_vm6 = vcmp.eq.s32.totalorder %v319_v37, %v1027_v29 }
  0x87   :  { %vm357_vm5 = vcmp.eq.s32.totalorder %v313_v34, %v1027_v29  ;;  %v638_v39 = vsel %vm359_vm6, 1.0, %v911_v30 }
  0x88   :  { %v636_v35 = vsel %vm357_vm5, 1.0, %v911_v30 }
  0x89   :  { %405 = vxpose.xlu0.b32.cont [2/16] (narrow) %v636_v35, 8  ;;  %v325_v40 = vpop.permute.xlu1 %324 }
  0x8a   :  { %v322_v38 = vpop.permute.xlu0 %321  ;;  %vm361_vm8 = vcmp.eq.s32.totalorder %v325_v40, %v1027_v29 }
  0x8b   :  { %vm360_vm7 = vcmp.eq.s32.totalorder %v322_v38, %v1027_v29  ;;  %v640_v43 = vsel %vm361_vm8, 1.0, %v911_v30 }
  0x8c   :  { %v639_v41 = vsel %vm360_vm7, 1.0, %v911_v30 }
  0x8d   :  { %406 = vxpose.xlu0.b32.cont [3/16] (narrow) %v637_v36, 8  ;;  %v331_v44 = vpop.permute.xlu1 %330 }
  0x8e   :  { %v328_v42 = vpop.permute.xlu0 %327  ;;  %vm363_vm10 = vcmp.eq.s32.totalorder %v331_v44, %v1027_v29 }
  0x8f   :  { %vm362_vm9 = vcmp.eq.s32.totalorder %v328_v42, %v1027_v29  ;;  %v642_v47 = vsel %vm363_vm10, 1.0, %v911_v30 }
  0x90   :  { %v641_v45 = vsel %vm362_vm9, 1.0, %v911_v30 }
  0x91   :  { %407 = vxpose.xlu0.b32.cont [4/16] (narrow) %v638_v39, 8  ;;  %v337_v48 = vpop.permute.xlu1 %336 }
  0x92   :  { %v334_v46 = vpop.permute.xlu0 %333  ;;  %vm365_vm12 = vcmp.eq.s32.totalorder %v337_v48, %v1027_v29 }
  0x93   :  { %vm364_vm11 = vcmp.eq.s32.totalorder %v334_v46, %v1027_v29  ;;  %v644_v51 = vsel %vm365_vm12, 1.0, %v911_v30 }
  0x94   :  { %v643_v49 = vsel %vm364_vm11, 1.0, %v911_v30 }
  0x95   :  { %408 = vxpose.xlu0.b32.cont [5/16] (narrow) %v639_v41, 8  ;;  %v343_v52 = vpop.permute.xlu1 %342 }
  0x96   :  { %v340_v50 = vpop.permute.xlu0 %339  ;;  %vm367_vm14 = vcmp.eq.s32.totalorder %v343_v52, %v1027_v29 }
  0x97   :  { %vm366_vm13 = vcmp.eq.s32.totalorder %v340_v50, %v1027_v29  ;;  %v646_v55 = vsel %vm367_vm14, 1.0, %v911_v30 }
  0x98   :  { %v645_v53 = vsel %vm366_vm13, 1.0, %v911_v30 }
  0x99   :  { %409 = vxpose.xlu0.b32.cont [6/16] (narrow) %v640_v43, 8  ;;  %v349_v56 = vpop.permute.xlu1 %348 }
  0x9a   :  { %v346_v54 = vpop.permute.xlu0 %345  ;;  %vm369_vm0 = vcmp.eq.s32.totalorder %v349_v56, %v1027_v29 }
  0x9b   :  { %vm368_vm15 = vcmp.eq.s32.totalorder %v346_v54, %v1027_v29  ;;  %v648_v59 = vsel %vm369_vm0, 1.0, %v911_v30 }
  0x9c   :  { %v647_v57 = vsel %vm368_vm15, 1.0, %v911_v30 }
  0x9d   :  { %410 = vxpose.xlu0.b32.cont [7/16] (narrow) %v641_v45, 8  ;;  %v355_v60 = vpop.permute.xlu1 %354 }
  0x9e   :  { %v352_v58 = vpop.permute.xlu0 %351  ;;  %vm371_vm2 = vcmp.eq.s32.totalorder %v355_v60, %v1027_v29 }
  0x9f   :  { %vm370_vm1 = vcmp.eq.s32.totalorder %v352_v58, %v1027_v29  ;;  %v650_v62 = vsel %vm371_vm2, 1.0, %v911_v30 }
  0xa0   :  { %v649_v61 = vsel %vm370_vm1, 1.0, %v911_v30 }
  0xa1   :  { %411 = vxpose.xlu0.b32.cont [8/16] (narrow) %v642_v47, 8 }
  0xa5   :  { %412 = vxpose.xlu0.b32.cont [9/16] (narrow) %v643_v49, 8 }
  0xa9   :  { %413 = vxpose.xlu0.b32.cont [10/16] (narrow) %v644_v51, 8 }
  0xad   :  { %414 = vxpose.xlu0.b32.cont [11/16] (narrow) %v645_v53, 8 }
  0xb1   :  { %415 = vxpose.xlu0.b32.cont [12/16] (narrow) %v646_v55, 8 }
  0xb5   :  { %416 = vxpose.xlu0.b32.cont [13/16] (narrow) %v647_v57, 8 }
  0xb9   :  { %417 = vxpose.xlu0.b32.cont [14/16] (narrow) %v648_v59, 8 }
  0xbd   :  { %418 = vxpose.xlu0.b32.cont [15/16] (narrow) %v649_v61, 8 }
  0xc1   :  { %419 = vxpose.xlu0.b32.end [16/16] (narrow) %v650_v62, 8 }
  0xd9   :  { %v761_v0 = vpop.f32.mrb[0].mxu0 }
  0xda   :  { %v156_v1 = vadd.f32 %v761_v0, %v1066_v63  ;;  %v147_v2 = vpop.f32.mrb[1].mxu0 }
  0xdb   :  { %v148_v3 = vadd.f32 %v1066_v63, %v147_v2  ;;  %v762_v4 = vpop.f32.mrb[2].mxu0 }
  0xdc   :  { %v509_v5 = vmul.f32 %v156_v1, %v156_v1  ;;  %v159_v6 = vadd.f32 %v762_v4, %v1066_v63  ;;  %v150_v7 = vpop.f32.mrb[3].mxu0 }
  0xdd   :  { %v507_v8 = vmul.f32 %v148_v3, %v148_v3  ;;  %v151_v9 = vadd.f32 %v1066_v63, %v150_v7 }
  0xde   :  { %v675_v10 = vpack.c.bf16 %v159_v6, %v156_v1  ;;  %v510_v11 = vmul.f32 %v159_v6, %v159_v6 }
  0xdf   :  { %v508_v12 = vmul.f32 %v151_v9, %v151_v9  ;;  %v670_v13 = vpack.c.bf16 %v151_v9, %v148_v3 }
  0xe0   :  { %707 = vst [vmem:[%s1132_s4 + $0x8] sm:$0xff] %v675_v10   ;;  %v873_v14 = vpack.c.bf16 %v510_v11, %v509_v5 }
  0xe1   :  { %v870_v15 = vpack.c.bf16 %v508_v12, %v507_v8  ;;  %v765_v16 = vpop.f32.mrb[4].mxu0  ;;  %671 = vst [vmem:[%s1132_s4] sm:$0xff] %v670_v13   ;;  %847 = vmatpush3.bf16.msra.mxu1 %v670_v13 }
  0xe2   :  { %v172_v17 = vadd.f32 %v765_v16, %v1066_v63  ;;  %v163_v18 = vpop.f32.mrb[5].mxu0  ;;  %848 = vmatprep.subr.bf16.mxu1 %v909_v27 }
  0xe3   :  { %v164_v19 = vadd.f32 %v1066_v63, %v163_v18  ;;  %v766_v20 = vpop.f32.mrb[6].mxu0  ;;  %871 = vmatpush3.bf16.msra.mxu0 %v870_v15 }
  0xe4   :  { %v513_v21 = vmul.f32 %v172_v17, %v172_v17  ;;  %v175_v22 = vadd.f32 %v766_v20, %v1066_v63  ;;  %v166_v23 = vpop.f32.mrb[7].mxu0  ;;  %872 = vmatprep.subr.bf16.mxu0 %v909_v27 }
  0xe5   :  { %v511_v24 = vmul.f32 %v164_v19, %v164_v19  ;;  %v167_v25 = vadd.f32 %v1066_v63, %v166_v23  ;;  %850 = vmatpush3.bf16.msra.mxu1 %v675_v10 }
  0xe6   :  { %v685_v26 = vpack.c.bf16 %v175_v22, %v172_v17  ;;  %v514_v28 = vmul.f32 %v175_v22, %v175_v22  ;;  %851 = vmatprep.subr.bf16.mxu1 %v909_v27 }
  0xe7   :  { %v680_v29 = vpack.c.bf16 %v167_v25, %v164_v19  ;;  %v512_v30 = vmul.f32 %v167_v25, %v167_v25  ;;  %874 = vmatpush3.bf16.msra.mxu0 %v873_v14 }
  0xe8   :  { %709 = vst [vmem:[%s1132_s4 + $0x18] sm:$0xff] %v685_v26   ;;  %v879_v31 = vpack.c.bf16 %v514_v28, %v513_v21  ;;  %875 = vmatprep.subr.bf16.mxu0 %v909_v27 }
  0xe9   :  { %708 = vst [vmem:[%s1132_s4 + $0x10] sm:$0xff] %v680_v29   ;;  %v876_v32 = vpack.c.bf16 %v512_v30, %v511_v24  ;;  %v769_v33 = vpop.f32.mrb[8].mxu0  ;;  %853 = vmatpush3.bf16.msra.mxu1 %v680_v29 }
  0xea   :  { %v188_v34 = vadd.f32 %v769_v33, %v1066_v63  ;;  %v179_v35 = vpop.f32.mrb[9].mxu0  ;;  %854 = vmatprep.subr.bf16.mxu1 %v909_v27 }
  0xeb   :  { %v180_v36 = vadd.f32 %v1066_v63, %v179_v35  ;;  %v770_v37 = vpop.f32.mrb[10].mxu0  ;;  %877 = vmatpush3.bf16.msra.mxu0 %v876_v32 }
  0xec   :  { %v517_v38 = vmul.f32 %v188_v34, %v188_v34  ;;  %v191_v39 = vadd.f32 %v770_v37, %v1066_v63  ;;  %v182_v40 = vpop.f32.mrb[11].mxu0  ;;  %878 = vmatprep.subr.bf16.mxu0 %v909_v27 }
  0xed   :  { %v515_v41 = vmul.f32 %v180_v36, %v180_v36  ;;  %v183_v42 = vadd.f32 %v1066_v63, %v182_v40  ;;  %856 = vmatpush3.bf16.msra.mxu1 %v685_v26 }
  0xee   :  { %v695_v43 = vpack.c.bf16 %v191_v39, %v188_v34  ;;  %v518_v44 = vmul.f32 %v191_v39, %v191_v39  ;;  %857 = vmatprep.subr.bf16.mxu1 %v909_v27 }
  0xef   :  { %v690_v45 = vpack.c.bf16 %v183_v42, %v180_v36  ;;  %v516_v46 = vmul.f32 %v183_v42, %v183_v42  ;;  %880 = vmatpush3.bf16.msra.mxu0 %v879_v31 }
  0xf0   :  { %711 = vst [vmem:[%s1132_s4 + $0x28] sm:$0xff] %v695_v43   ;;  %v885_v47 = vpack.c.bf16 %v518_v44, %v517_v38  ;;  %881 = vmatprep.subr.bf16.mxu0 %v909_v27 }
  0xf1   :  { %710 = vst [vmem:[%s1132_s4 + $0x20] sm:$0xff] %v690_v45   ;;  %v882_v48 = vpack.c.bf16 %v516_v46, %v515_v41  ;;  %v773_v49 = vpop.f32.mrb[12].mxu0  ;;  %859 = vmatpush3.bf16.msra.mxu1 %v690_v45 }
  0xf2   :  { %v204_v50 = vadd.f32 %v773_v49, %v1066_v63  ;;  %v195_v51 = vpop.f32.mrb[13].mxu0  ;;  %860 = vmatprep.subr.bf16.mxu1 %v909_v27 }
  0xf3   :  { %v196_v52 = vadd.f32 %v1066_v63, %v195_v51  ;;  %v774_v53 = vpop.f32.mrb[14].mxu0  ;;  %883 = vmatpush3.bf16.msra.mxu0 %v882_v48 }
  0xf4   :  { %v521_v54 = vmul.f32 %v204_v50, %v204_v50  ;;  %v207_v55 = vadd.f32 %v774_v53, %v1066_v63  ;;  %v198_v56 = vpop.f32.mrb[15].mxu0  ;;  %884 = vmatprep.subr.bf16.mxu0 %v909_v27 }
  0xf5   :  { %v519_v57 = vmul.f32 %v196_v52, %v196_v52  ;;  %v199_v58 = vadd.f32 %v1066_v63, %v198_v56  ;;  %862 = vmatpush3.bf16.msra.mxu1 %v695_v43 }
  0xf6   :  { %v705_v59 = vpack.c.bf16 %v207_v55, %v204_v50  ;;  %v522_v60 = vmul.f32 %v207_v55, %v207_v55  ;;  %863 = vmatprep.subr.bf16.mxu1 %v909_v27 }
  0xf7   :  { %v700_v61 = vpack.c.bf16 %v199_v58, %v196_v52  ;;  %v520_v62 = vmul.f32 %v199_v58, %v199_v58  ;;  %886 = vmatpush3.bf16.msra.mxu0 %v885_v47 }
  0xf8   :  { %713 = vst [vmem:[%s1132_s4 + $0x38] sm:$0xff] %v705_v59   ;;  %v891_v0 = vpack.c.bf16 %v522_v60, %v521_v54  ;;  %887 = vmatprep.subr.bf16.mxu0 %v909_v27 }
  0xf9   :  { %712 = vst [vmem:[%s1132_s4 + $0x30] sm:$0xff] %v700_v61   ;;  %v888_v63 = vpack.c.bf16 %v520_v62, %v519_v57  ;;  %865 = vmatpush3.bf16.msra.mxu1 %v700_v61 }
  0xfa   :  { %866 = vmatprep.subr.bf16.mxu1 %v909_v27 }
  0xfb   :  { %889 = vmatpush3.bf16.msra.mxu0 %v888_v63 }
  0xfc   :  { %890 = vmatprep.subr.bf16.mxu0 %v909_v27 }
  0xfd   :  { %868 = vmatpush3.bf16.msra.mxu1 %v705_v59 }
  0xff   :  { %892 = vmatpush3.bf16.msra.mxu0 %v891_v0 }
 0x105   :  { %v420_v1 = vpop.trf.xlu0 }
 0x106   :  { %808 = vmatmul.mubr.f32.vlgmr.msra.gmra.mrb[0].mxu1 %v420_v1  ;;  %843 = vmatmul.mubr.f32.vlgmr.msra.gmra.mrb[16].mxu0 %v420_v1 }
 0x1d9   :  { %v502_v2 = vpop.f32.mrb[0].mxu1  ;;  %v589_v3 = vpop.f32.mrb[16].mxu0 }
 0x1da   :  { %506 = vst [vmem:[%s1133_s5] sm:$0xff] %v502_v2  ;;  %593 = vst [vmem:[%s1133_s5 + $0x8] sm:$0xff] %v589_v3  ;;  %v809_v4 = vpop.f32.mrb[1].mxu1  ;;  %v844_v5 = vpop.f32.mrb[17].mxu0 }

// kernel: efmlp_forward.5
= control target key start
LH: loop header
LB: loop body
LE: loop exit
PB: predicated region body
PF: predicated region fallthrough
CT: control target
= control target key end

     0   :  { %v1172_v0 = vmov 0   ;;  %v55_v18 = vlaneseq  ;;  %vm153_vm0 = vcmask 64512   ;;  %v1173_v30 = vmov 0.0   ;;  %s1407_s3 = inlined_call_operand.vmem [shape: f32[8,1], index: 3, kind: input, shape index: {}]   ;;  %s1408_s1 = inlined_call_operand.vmem [shape: s32[128,1], index: 1, kind: input, shape index: {}]   ;;  %s1409_s4 = inlined_call_operand.vmem [shape: bf16[128,128], index: 4, kind: input, shape index: {}]   ;;  %s1410_s2 = inlined_call_operand.vmem [shape: f32[8,256], index: 2, kind: input, shape index: {}]   ;;  %s1411_s0 = inlined_call_operand.vmem [shape: bf16[128,128], index: 0, kind: input, shape index: {}]   ;;  %s1412_s5 = inlined_call_operand.vmem [shape: f32[1,128], index: 5, kind: input, shape index: {}]   ;;  %s1413_s6 = inlined_call_operand.vmem [shape: bf16[128,128], index: 6, kind: output, shape index: {}]  }
   0x1   :  { %1161 = vset.pattern.permute.xlu1 %v1172_v0  ;;  %1160 = vset.pattern.permute.xlu0 %v1172_v0  ;;  %v24_v1 = vld [vmem:[%s1407_s3] sm:$0xff]  ;;  %v40_v2 = vld [vmem:[%s1408_s1 + $0x8] sm:$0xff]  ;;  %v41_v3 = vld [vmem:[%s1408_s1 + $0x10] sm:$0xff] }
   0x2   :  { %29 = vperm.xlu0 %1160, %v24_v1   ;;  %61 = vperm.xlu1 %1161, %v40_v2   ;;  %v39_v4 = vld [vmem:[%s1408_s1] sm:$0xff]  ;;  %v42_v6 = vld [vmem:[%s1408_s1 + $0x18] sm:$0xff]  ;;  %v45_v7 = vld [vmem:[%s1408_s1 + $0x30] sm:$0xff]  ;;  %v1266_v24 = vand.u32 127, %v55_v18 }
   0x3   :  { %v43_v5 = vld [vmem:[%s1408_s1 + $0x20] sm:$0xff]  ;;  %v44_v8 = vld [vmem:[%s1408_s1 + $0x28] sm:$0xff]  ;;  %v46_v10 = vld [vmem:[%s1408_s1 + $0x38] sm:$0xff] }
   0x4   :  { %v47_v9 = vld [vmem:[%s1408_s1 + $0x40] sm:$0xff]  ;;  %v49_v11 = vld [vmem:[%s1408_s1 + $0x50] sm:$0xff]  ;;  %v48_v12 = vld [vmem:[%s1408_s1 + $0x48] sm:$0xff] }
   0x5   :  { %v51_v13 = vld [vmem:[%s1408_s1 + $0x60] sm:$0xff]  ;;  %v50_v14 = vld [vmem:[%s1408_s1 + $0x58] sm:$0xff]  ;;  %v53_v15 = vld [vmem:[%s1408_s1 + $0x70] sm:$0xff] }
   0x6   :  { %64 = vperm.xlu1 %1161, %v41_v3   ;;  %58 = vperm.xlu0 %1160, %v39_v4   ;;  %v52_v16 = vld [vmem:[%s1408_s1 + $0x68] sm:$0xff]  ;;  %v54_v17 = vld [vmem:[%s1408_s1 + $0x78] sm:$0xff]  ;;  %v25_v19 = vld [vmem:[%s1410_s2] sm:$0xff] }
   0x7   :  { %v26_v21 = vld [vmem:[%s1410_s2 + $0x8] sm:$0xff]  ;;  %v1162_v42 = vld [vmem:[%s1409_s4] sm:$0xff]   ;;  %v1164_v49 = vld [vmem:[%s1409_s4 + $0x10] sm:$0xff]  }
   0x8   :  { %v1163_v45 = vld [vmem:[%s1409_s4 + $0x8] sm:$0xff]   ;;  %v1165_v53 = vld [vmem:[%s1409_s4 + $0x18] sm:$0xff]   ;;  %v1166_v58 = vld [vmem:[%s1409_s4 + $0x20] sm:$0xff]  }
   0xa   :  { %70 = vperm.xlu1 %1161, %v43_v5   ;;  %67 = vperm.xlu0 %1160, %v42_v6   ;;  %v1167_v5 = vld [vmem:[%s1409_s4 + $0x28] sm:$0xff]   ;;  %v1168_v6 = vld [vmem:[%s1409_s4 + $0x30] sm:$0xff]  }
   0xe   :  { %76 = vperm.xlu1 %1161, %v45_v7   ;;  %73 = vperm.xlu0 %1160, %v44_v8   ;;  %v1169_v7 = vld [vmem:[%s1409_s4 + $0x38] sm:$0xff]   ;;  %v923_v8 = vld [vmem:[%s1411_s0] sm:$0xff]  }
  0x12   :  { %82 = vperm.xlu1 %1161, %v47_v9   ;;  %79 = vperm.xlu0 %1160, %v46_v10   ;;  %v925_v9 = vunpack.c.h.bf16 %v923_v8  ;;  %v924_v10 = vunpack.c.l.bf16 %v923_v8 }
  0x16   :  { %88 = vperm.xlu1 %1161, %v49_v11   ;;  %85 = vperm.xlu0 %1160, %v48_v12   ;;  %v994_v11 = vld [vmem:[%s1411_s0 + $0x8] sm:$0xff]  }
  0x17   :  { %v928_v18 = vunpack.c.l.bf16 %v994_v11 }
  0x1a   :  { %94 = vperm.xlu1 %1161, %v51_v13   ;;  %91 = vperm.xlu0 %1160, %v50_v14  }
  0x1e   :  { %100 = vperm.xlu1 %1161, %v53_v15   ;;  %97 = vperm.xlu0 %1160, %v52_v16   ;;  %v929_v15 = vunpack.c.h.bf16 %v994_v11 }
  0x22   :  { %103 = vperm.xlu0 %1160, %v54_v17  }
  0x81   :  { %v30_v20 = vpop.permute.xlu0 %29  ;;  %v62_v22 = vpop.permute.xlu1 %61 }
  0x82   :  { %v32_v23 = vmul.f32 %v30_v20, %v25_v19  ;;  %v33_v25 = vmul.f32 %v30_v20, %v26_v21  ;;  %vm106_vm2 = vcmp.eq.s32.totalorder %v62_v22, %v1266_v24  ;;  %v995_v19 = vld [vmem:[%s1411_s0 + $0x10] sm:$0xff]  }
  0x83   :  { %v834_v39 = vsel %vm106_vm2, 1.0, %v1173_v30 }
  0x84   :  { %v34_v26 = vmul.f32 %v32_v23, %v32_v23 }
  0x85   :  { %v59_v27 = vpop.permute.xlu0 %58  ;;  %v65_v29 = vpop.permute.xlu1 %64 }
  0x86   :  { %v35_v28 = vsub.f32 %v33_v25, %v34_v26  ;;  %vm105_vm1 = vcmp.eq.s32.totalorder %v59_v27, %v1266_v24  ;;  %vm107_vm3 = vcmp.eq.s32.totalorder %v65_v29, %v1266_v24  ;;  %v933_v27 = vunpack.c.h.bf16 %v995_v19 }
  0x87   :  { %v833_v31 = vsel %vm105_vm1, 1.0, %v1173_v30  ;;  %v835_v43 = vsel %vm107_vm3, 1.0, %v1173_v30 }
  0x88   :  { %v36_v32 = vmax.f32 %v35_v28, 0.0  ;;  %1060 = vmatprep.mubr.msk.f32.mxu0 %vm153_vm0, %v833_v31  ;;  %1086 = vmatprep.mubr.msk.f32.mxu1 %vm153_vm0, %v833_v31  ;;  %v932_v31 = vunpack.c.l.bf16 %v995_v19 }
  0x89   :  { %v68_v34 = vpop.permute.xlu0 %67  ;;  %v71_v35 = vpop.permute.xlu1 %70 }
  0x8a   :  { %v37_v33 = vadd.f32 1e-05, %v36_v32  ;;  %vm108_vm4 = vcmp.eq.s32.totalorder %v68_v34, %v1266_v24  ;;  %vm109_vm5 = vcmp.eq.s32.totalorder %v71_v35, %v1266_v24  ;;  %v996_v32 = vld [vmem:[%s1411_s0 + $0x18] sm:$0xff]  }
  0x8b   :  { %v836_v46 = vsel %vm108_vm4, 1.0, %v1173_v30  ;;  %v837_v48 = vsel %vm109_vm5, 1.0, %v1173_v30 }
  0x8c   :  { %1170 = vrsqrt.f32 %v37_v33 }
  0x8d   :  { %v74_v36 = vpop.permute.xlu0 %73  ;;  %v77_v37 = vpop.permute.xlu1 %76 }
  0x8e   :  { %vm110_vm6 = vcmp.eq.s32.totalorder %v74_v36, %v1266_v24  ;;  %vm111_vm7 = vcmp.eq.s32.totalorder %v77_v37, %v1266_v24 }
  0x8f   :  { %v838_v51 = vsel %vm110_vm6, 1.0, %v1173_v30  ;;  %v839_v52 = vsel %vm111_vm7, 1.0, %v1173_v30 }
  0x91   :  { %v80_v40 = vpop.permute.xlu0 %79  ;;  %v83_v44 = vpop.permute.xlu1 %82 }
  0x92   :  { %vm112_vm8 = vcmp.eq.s32.totalorder %v80_v40, %v1266_v24  ;;  %vm113_vm9 = vcmp.eq.s32.totalorder %v83_v44, %v1266_v24 }
  0x93   :  { %v840_v55 = vsel %vm112_vm8, 1.0, %v1173_v30  ;;  %v841_v56 = vsel %vm113_vm9, 1.0, %v1173_v30 }
  0x95   :  { %v86_v47 = vpop.permute.xlu0 %85  ;;  %v89_v50 = vpop.permute.xlu1 %88 }
  0x96   :  { %v1171_v38 = vpop.eup %1170  ;;  %vm114_vm10 = vcmp.eq.s32.totalorder %v86_v47, %v1266_v24  ;;  %vm115_vm11 = vcmp.eq.s32.totalorder %v89_v50, %v1266_v24 }
  0x97   :  { %1058 = vmatprep.subr.mxu0 %v1171_v38  ;;  %v347_v41 = vmul.f32 %v1171_v38, %v32_v23  ;;  %v842_v59 = vsel %vm114_vm10, 1.0, %v1173_v30  ;;  %v843_v61 = vsel %vm115_vm11, 1.0, %v1173_v30 }
  0x98   :  { %1059 = vmatpush3.msra.mxu0 %v1171_v38 }
  0x99   :  { %1084 = vmatprep.subr.mxu1 %v347_v41  ;;  %1061 = vmatmul.mubr.msk.f32.vlgmr.msra.gmra.mrb[0].mxu0 %vm153_vm0, %v834_v39  ;;  %v92_v54 = vpop.permute.xlu0 %91  ;;  %v95_v57 = vpop.permute.xlu1 %94 }
  0x9a   :  { %1063 = vmatprep.mubr.msk.f32.mxu0 %vm153_vm0, %v835_v43  ;;  %1085 = vmatpush3.msra.mxu1 %v347_v41  ;;  %vm116_vm12 = vcmp.eq.s32.totalorder %v92_v54, %v1266_v24  ;;  %vm117_vm13 = vcmp.eq.s32.totalorder %v95_v57, %v1266_v24  ;;  %v937_v41 = vunpack.c.h.bf16 %v996_v32 }
  0x9b   :  { %1087 = vmatmul.mubr.msk.f32.vlgmr.msra.gmra.mrb[0].mxu1 %vm153_vm0, %v834_v39  ;;  %1110 = vmatprep.subr.bf16.mxu0 %v1162_v42  ;;  %v844_v63 = vsel %vm116_vm12, 1.0, %v1173_v30  ;;  %v845_v0 = vsel %vm117_vm13, 1.0, %v1173_v30 }
  0x9c   :  { %1089 = vmatprep.mubr.msk.f32.mxu1 %vm153_vm0, %v835_v43  ;;  %1111 = vmatpush3.bf16.msra.mxu0 %v1162_v42 }
  0x9d   :  { %1064 = vmatmul.mubr.msk.f32.gmra.mrb[2].mxu0 %vm153_vm0, %v836_v46  ;;  %1112 = vmatprep.subr.bf16.mxu0 %v1163_v45  ;;  %v98_v60 = vpop.permute.xlu0 %97  ;;  %v101_v62 = vpop.permute.xlu1 %100 }
  0x9e   :  { %1066 = vmatprep.mubr.msk.f32.mxu0 %vm153_vm0, %v837_v48  ;;  %1142 = vmatprep.subr.bf16.mxu1 %v1162_v42  ;;  %vm118_vm14 = vcmp.eq.s32.totalorder %v98_v60, %v1266_v24  ;;  %vm119_vm15 = vcmp.eq.s32.totalorder %v101_v62, %v1266_v24  ;;  %v998_v60 = vld [vmem:[%s1411_s0 + $0x28] sm:$0xff]  }
  0x9f   :  { %1090 = vmatmul.mubr.msk.f32.gmra.mrb[2].mxu1 %vm153_vm0, %v836_v46  ;;  %v846_v2 = vsel %vm118_vm14, 1.0, %v1173_v30  ;;  %v847_v3 = vsel %vm119_vm15, 1.0, %v1173_v30  ;;  %v997_v46 = vld [vmem:[%s1411_s0 + $0x20] sm:$0xff]  }
  0xa0   :  { %1092 = vmatprep.mubr.msk.f32.mxu1 %vm153_vm0, %v837_v48  ;;  %1113 = vmatpush3.bf16.msra.mxu0 %v1163_v45 }
  0xa1   :  { %1067 = vmatmul.mubr.msk.f32.gmra.mrb[4].mxu0 %vm153_vm0, %v838_v51  ;;  %1114 = vmatprep.subr.bf16.mxu0 %v1164_v49  ;;  %v104_v1 = vpop.permute.xlu0 %103 }
  0xa2   :  { %1069 = vmatprep.mubr.msk.f32.mxu0 %vm153_vm0, %v839_v52  ;;  %1150 = vmatpush3.bf16.msra.mxu1 %v1162_v42  ;;  %vm120_vm1 = vcmp.eq.s32.totalorder %v104_v1, %v1266_v24 }
  0xa3   :  { %1093 = vmatmul.mubr.msk.f32.gmra.mrb[4].mxu1 %vm153_vm0, %v838_v51  ;;  %1143 = vmatprep.subr.bf16.mxu1 %v1163_v45  ;;  %v848_v4 = vsel %vm120_vm1, 1.0, %v1173_v30 }
  0xa4   :  { %1095 = vmatprep.mubr.msk.f32.mxu1 %vm153_vm0, %v839_v52  ;;  %1115 = vmatpush3.bf16.msra.mxu0 %v1164_v49 }
  0xa5   :  { %1070 = vmatmul.mubr.msk.f32.gmra.mrb[6].mxu0 %vm153_vm0, %v840_v55  ;;  %1116 = vmatprep.subr.bf16.mxu0 %v1165_v53 }
  0xa6   :  { %1072 = vmatprep.mubr.msk.f32.mxu0 %vm153_vm0, %v841_v56  ;;  %1151 = vmatpush3.bf16.msra.mxu1 %v1163_v45  ;;  %v936_v45 = vunpack.c.l.bf16 %v996_v32 }
  0xa7   :  { %1096 = vmatmul.mubr.msk.f32.gmra.mrb[6].mxu1 %vm153_vm0, %v840_v55  ;;  %1144 = vmatprep.subr.bf16.mxu1 %v1164_v49  ;;  %v941_v55 = vunpack.c.h.bf16 %v997_v46 }
  0xa8   :  { %1098 = vmatprep.mubr.msk.f32.mxu1 %vm153_vm0, %v841_v56  ;;  %1117 = vmatpush3.bf16.msra.mxu0 %v1165_v53 }
  0xa9   :  { %1073 = vmatmul.mubr.msk.f32.gmra.mrb[8].mxu0 %vm153_vm0, %v842_v59  ;;  %1118 = vmatprep.subr.bf16.mxu0 %v1166_v58 }
  0xaa   :  { %1075 = vmatprep.mubr.msk.f32.mxu0 %vm153_vm0, %v843_v61  ;;  %1152 = vmatpush3.bf16.msra.mxu1 %v1164_v49 }
  0xab   :  { %1099 = vmatmul.mubr.msk.f32.gmra.mrb[8].mxu1 %vm153_vm0, %v842_v59  ;;  %1145 = vmatprep.subr.bf16.mxu1 %v1165_v53  ;;  %v940_v59 = vunpack.c.l.bf16 %v997_v46 }
  0xac   :  { %1101 = vmatprep.mubr.msk.f32.mxu1 %vm153_vm0, %v843_v61  ;;  %1119 = vmatpush3.bf16.msra.mxu0 %v1166_v58 }
  0xad   :  { %1076 = vmatmul.mubr.msk.f32.gmra.mrb[10].mxu0 %vm153_vm0, %v844_v63  ;;  %1120 = vmatprep.subr.bf16.mxu0 %v1167_v5 }
  0xae   :  { %1078 = vmatprep.mubr.msk.f32.mxu0 %vm153_vm0, %v845_v0  ;;  %1153 = vmatpush3.bf16.msra.mxu1 %v1165_v53 }
  0xaf   :  { %1102 = vmatmul.mubr.msk.f32.gmra.mrb[10].mxu1 %vm153_vm0, %v844_v63  ;;  %1146 = vmatprep.subr.bf16.mxu1 %v1166_v58 }
  0xb0   :  { %1104 = vmatprep.mubr.msk.f32.mxu1 %vm153_vm0, %v845_v0  ;;  %1121 = vmatpush3.bf16.msra.mxu0 %v1167_v5 }
  0xb1   :  { %1079 = vmatmul.mubr.msk.f32.gmra.mrb[12].mxu0 %vm153_vm0, %v846_v2  ;;  %1122 = vmatprep.subr.bf16.mxu0 %v1168_v6 }
  0xb2   :  { %1081 = vmatprep.mubr.msk.f32.mxu0 %vm153_vm0, %v847_v3  ;;  %1154 = vmatpush3.bf16.msra.mxu1 %v1166_v58 }
  0xb3   :  { %1105 = vmatmul.mubr.msk.f32.gmra.mrb[12].mxu1 %vm153_vm0, %v846_v2  ;;  %1147 = vmatprep.subr.bf16.mxu1 %v1167_v5 }
  0xb4   :  { %1107 = vmatprep.mubr.msk.f32.mxu1 %vm153_vm0, %v847_v3  ;;  %1123 = vmatpush3.bf16.msra.mxu0 %v1168_v6 }
  0xb5   :  { %1082 = vmatmul.mubr.msk.f32.gmra.mrb[14].mxu0 %vm153_vm0, %v848_v4  ;;  %1124 = vmatprep.subr.bf16.mxu0 %v1169_v7 }
  0xb6   :  { %1155 = vmatpush3.bf16.msra.mxu1 %v1167_v5  ;;  %v945_v5 = vunpack.c.h.bf16 %v998_v60 }
  0xb7   :  { %1108 = vmatmul.mubr.msk.f32.gmra.mrb[14].mxu1 %vm153_vm0, %v848_v4  ;;  %1148 = vmatprep.subr.bf16.mxu1 %v1168_v6 }
  0xb8   :  { %1125 = vmatpush3.bf16.msra.mxu0 %v1169_v7 }
  0xba   :  { %1156 = vmatpush3.bf16.msra.mxu1 %v1168_v6 }
  0xbb   :  { %1149 = vmatprep.subr.bf16.mxu1 %v1169_v7 }
  0xbe   :  { %1157 = vmatpush3.bf16.msra.mxu1 %v1169_v7 }
 0x16c   :  { %v1062_v12 = vpop.f32.mrb[0].mxu0 }
 0x16d   :  { %v526_v13 = vmul.f32 %v1062_v12, %v925_v9  ;;  %v268_v14 = vpop.f32.mrb[1].mxu0  ;;  %v944_v9 = vunpack.c.l.bf16 %v998_v60 }
 0x16e   :  { %v525_v16 = vmul.f32 %v924_v10, %v268_v14  ;;  %v1088_v17 = vpop.f32.mrb[0].mxu1  ;;  %v999_v10 = vld [vmem:[%s1411_s0 + $0x30] sm:$0xff]  }
 0x16f   :  { %v542_v20 = vsub.f32 %v526_v13, %v1088_v17  ;;  %v414_v21 = vpop.f32.mrb[1].mxu1  ;;  %v949_v19 = vunpack.c.h.bf16 %v999_v10 }
 0x170   :  { %v541_v22 = vsub.f32 %v525_v16, %v414_v21  ;;  %v1065_v23 = vpop.f32.mrb[2].mxu0 }
 0x171   :  { %v558_v24 = vmax.f32 %v542_v20, 0.0  ;;  %v528_v25 = vmul.f32 %v1065_v23, %v929_v15  ;;  %v278_v26 = vpop.f32.mrb[3].mxu0  ;;  %v948_v23 = vunpack.c.l.bf16 %v999_v10 }
 0x172   :  { %v557_v28 = vmax.f32 %v541_v22, 0.0  ;;  %v527_v29 = vmul.f32 %v928_v18, %v278_v26  ;;  %v1091_v30 = vpop.f32.mrb[2].mxu1 }
 0x173   :  { %v544_v33 = vsub.f32 %v528_v25, %v1091_v30  ;;  %v424_v34 = vpop.f32.mrb[3].mxu1 }
 0x174   :  { %v573_v35 = vpack.c.bf16 %v558_v24, %v557_v28  ;;  %v543_v36 = vsub.f32 %v527_v29, %v424_v34  ;;  %v1068_v37 = vpop.f32.mrb[4].mxu0  ;;  %v1000_v24 = vld [vmem:[%s1411_s0 + $0x38] sm:$0xff]  }
 0x175   :  { %v560_v38 = vmax.f32 %v544_v33, 0.0  ;;  %v530_v39 = vmul.f32 %v1068_v37, %v933_v27  ;;  %v288_v40 = vpop.f32.mrb[5].mxu0  ;;  %v953_v33 = vunpack.c.h.bf16 %v1000_v24  ;;  %v952_v37 = vunpack.c.l.bf16 %v1000_v24 }
 0x176   :  { %v559_v42 = vmax.f32 %v543_v36, 0.0  ;;  %v529_v43 = vmul.f32 %v932_v31, %v288_v40  ;;  %v1094_v44 = vpop.f32.mrb[4].mxu1  ;;  %1126 = vmatprep.mubr.bf16.mxu0 %v573_v35 }
 0x177   :  { %v546_v47 = vsub.f32 %v530_v39, %v1094_v44  ;;  %v434_v48 = vpop.f32.mrb[5].mxu1 }
 0x178   :  { %v574_v49 = vpack.c.bf16 %v560_v38, %v559_v42  ;;  %v545_v50 = vsub.f32 %v529_v43, %v434_v48  ;;  %v1071_v51 = vpop.f32.mrb[6].mxu0 }
 0x179   :  { %v562_v52 = vmax.f32 %v546_v47, 0.0  ;;  %v532_v53 = vmul.f32 %v1071_v51, %v937_v41  ;;  %v298_v54 = vpop.f32.mrb[7].mxu0 }
 0x17a   :  { %v561_v56 = vmax.f32 %v545_v50, 0.0  ;;  %v531_v57 = vmul.f32 %v936_v45, %v298_v54  ;;  %v1097_v58 = vpop.f32.mrb[6].mxu1  ;;  %1127 = vmatmul.mubr.bf16.vlgmr.msra.gmra.mrb[16].mxu0 %v574_v49 }
 0x17b   :  { %v548_v61 = vsub.f32 %v532_v53, %v1097_v58  ;;  %v444_v62 = vpop.f32.mrb[7].mxu1 }
 0x17c   :  { %v575_v63 = vpack.c.bf16 %v562_v52, %v561_v56  ;;  %v547_v0 = vsub.f32 %v531_v57, %v444_v62  ;;  %v1074_v1 = vpop.f32.mrb[8].mxu0  ;;  %v881_v57 = vld [vmem:[%s1412_s5] ss:$0 sm:$0xff] }
 0x17d   :  { %v564_v2 = vmax.f32 %v548_v61, 0.0  ;;  %v534_v3 = vmul.f32 %v1074_v1, %v941_v55  ;;  %v308_v4 = vpop.f32.mrb[9].mxu0 }
 0x17e   :  { %v563_v6 = vmax.f32 %v547_v0, 0.0  ;;  %v533_v7 = vmul.f32 %v940_v59, %v308_v4  ;;  %v1100_v8 = vpop.f32.mrb[8].mxu1  ;;  %1130 = vmatprep.mubr.bf16.mxu0 %v575_v63 }
 0x17f   :  { %v550_v11 = vsub.f32 %v534_v3, %v1100_v8  ;;  %v454_v12 = vpop.f32.mrb[9].mxu1 }
 0x180   :  { %v576_v13 = vpack.c.bf16 %v564_v2, %v563_v6  ;;  %v549_v14 = vsub.f32 %v533_v7, %v454_v12  ;;  %v1077_v15 = vpop.f32.mrb[10].mxu0 }
 0x181   :  { %v566_v16 = vmax.f32 %v550_v11, 0.0  ;;  %v536_v17 = vmul.f32 %v1077_v15, %v945_v5  ;;  %v318_v18 = vpop.f32.mrb[11].mxu0 }
 0x182   :  { %v565_v20 = vmax.f32 %v549_v14, 0.0  ;;  %v535_v21 = vmul.f32 %v944_v9, %v318_v18  ;;  %v1103_v22 = vpop.f32.mrb[10].mxu1  ;;  %1131 = vmatmul.mubr.bf16.gmra.mrb[20].mxu0 %v576_v13 }
 0x183   :  { %v552_v25 = vsub.f32 %v536_v17, %v1103_v22  ;;  %v464_v26 = vpop.f32.mrb[11].mxu1 }
 0x184   :  { %v577_v27 = vpack.c.bf16 %v566_v16, %v565_v20  ;;  %v551_v28 = vsub.f32 %v535_v21, %v464_v26  ;;  %v1080_v29 = vpop.f32.mrb[12].mxu0 }
 0x185   :  { %v568_v30 = vmax.f32 %v552_v25, 0.0  ;;  %v538_v31 = vmul.f32 %v1080_v29, %v949_v19  ;;  %v328_v32 = vpop.f32.mrb[13].mxu0 }
 0x186   :  { %v567_v34 = vmax.f32 %v551_v28, 0.0  ;;  %v537_v35 = vmul.f32 %v948_v23, %v328_v32  ;;  %v1106_v36 = vpop.f32.mrb[12].mxu1  ;;  %1134 = vmatprep.mubr.bf16.mxu1 %v577_v27 }
 0x187   :  { %v554_v38 = vsub.f32 %v538_v31, %v1106_v36  ;;  %v474_v39 = vpop.f32.mrb[13].mxu1 }
 0x188   :  { %v578_v40 = vpack.c.bf16 %v568_v30, %v567_v34  ;;  %v553_v41 = vsub.f32 %v537_v35, %v474_v39  ;;  %v1083_v42 = vpop.f32.mrb[14].mxu0 }
 0x189   :  { %v570_v43 = vmax.f32 %v554_v38, 0.0  ;;  %v540_v44 = vmul.f32 %v1083_v42, %v953_v33  ;;  %v338_v45 = vpop.f32.mrb[15].mxu0 }
 0x18a   :  { %v569_v46 = vmax.f32 %v553_v41, 0.0  ;;  %v539_v47 = vmul.f32 %v952_v37, %v338_v45  ;;  %v1109_v48 = vpop.f32.mrb[14].mxu1  ;;  %1135 = vmatmul.mubr.bf16.vlgmr.msra.gmra.mrb[16].mxu1 %v578_v40 }
 0x18b   :  { %v556_v49 = vsub.f32 %v540_v44, %v1109_v48  ;;  %v484_v50 = vpop.f32.mrb[15].mxu1 }
 0x18c   :  { %v579_v51 = vpack.c.bf16 %v570_v43, %v569_v46  ;;  %v555_v52 = vsub.f32 %v539_v47, %v484_v50 }
 0x18d   :  { %v572_v53 = vmax.f32 %v556_v49, 0.0 }
 0x18e   :  { %v571_v54 = vmax.f32 %v555_v52, 0.0  ;;  %1138 = vmatprep.mubr.bf16.mxu1 %v579_v51 }
 0x190   :  { %v580_v55 = vpack.c.bf16 %v572_v53, %v571_v54 }
 0x192   :  { %1139 = vmatmul.mubr.bf16.gmra.mrb[20].mxu1 %v580_v55 }
 0x24d   :  { %v1128_v56 = vpop.f32.mrb[16].mxu0 }
 0x24e   :  { %v686_v58 = vpop.f32.mrb[17].mxu0  ;;  %v695_v60 = vadd.f32 %v1128_v56, %v881_v57 }
 0x24f   :  { %v1129_v59 = vpop.f32.mrb[18].mxu0  ;;  %v687_v63 = vadd.f32 %v881_v57, %v686_v58 }
 0x250   :  { %v698_v61 = vadd.f32 %v1129_v59, %v881_v57  ;;  %v689_v62 = vpop.f32.mrb[19].mxu0 }
 0x251   :  { %v690_v0 = vadd.f32 %v881_v57, %v689_v62 }
 0x252   :  { %v962_v1 = vpack.c.bf16 %v698_v61, %v695_v60 }
 0x253   :  { %v957_v2 = vpack.c.bf16 %v690_v0, %v687_v63 }
 0x254   :  { %1001 = vst [vmem:[%s1413_s6 + $0x8] sm:$0xff] %v962_v1  }
 0x255   :  { %958 = vst [vmem:[%s1413_s6] sm:$0xff] %v957_v2   ;;  %v1132_v3 = vpop.f32.mrb[20].mxu0 }
 0x256   :  { %v702_v4 = vpop.f32.mrb[21].mxu0  ;;  %v711_v6 = vadd.f32 %v1132_v3, %v881_v57 }
 0x257   :  { %v1133_v5 = vpop.f32.mrb[22].mxu0  ;;  %v703_v9 = vadd.f32 %v881_v57, %v702_v4 }
 0x258   :  { %v714_v7 = vadd.f32 %v1133_v5, %v881_v57  ;;  %v705_v8 = vpop.f32.mrb[23].mxu0 }
 0x259   :  { %v706_v10 = vadd.f32 %v881_v57, %v705_v8 }
 0x25a   :  { %v972_v11 = vpack.c.bf16 %v714_v7, %v711_v6 }
 0x25b   :  { %v967_v12 = vpack.c.bf16 %v706_v10, %v703_v9 }
 0x25c   :  { %1003 = vst [vmem:[%s1413_s6 + $0x18] sm:$0xff] %v972_v11  }
 0x25d   :  { %1002 = vst [vmem:[%s1413_s6 + $0x10] sm:$0xff] %v967_v12   ;;  %v1136_v13 = vpop.f32.mrb[16].mxu1 }
 0x25e   :  { %v718_v14 = vpop.f32.mrb[17].mxu1  ;;  %v727_v16 = vadd.f32 %v1136_v13, %v881_v57 }
 0x25f   :  { %v1137_v15 = vpop.f32.mrb[18].mxu1  ;;  %v719_v19 = vadd.f32 %v881_v57, %v718_v14 }
 0x260   :  { %v730_v17 = vadd.f32 %v1137_v15, %v881_v57  ;;  %v721_v18 = vpop.f32.mrb[19].mxu1 }
 0x261   :  { %v722_v20 = vadd.f32 %v881_v57, %v721_v18 }
 0x262   :  { %v982_v21 = vpack.c.bf16 %v730_v17, %v727_v16 }
 0x263   :  { %v977_v22 = vpack.c.bf16 %v722_v20, %v719_v19 }
 0x264   :  { %1005 = vst [vmem:[%s1413_s6 + $0x28] sm:$0xff] %v982_v21  }
 0x265   :  { %1004 = vst [vmem:[%s1413_s6 + $0x20] sm:$0xff] %v977_v22   ;;  %v1140_v23 = vpop.f32.mrb[20].mxu1 }
 0x266   :  { %v734_v24 = vpop.f32.mrb[21].mxu1  ;;  %v743_v26 = vadd.f32 %v1140_v23, %v881_v57 }
 0x267   :  { %v1141_v25 = vpop.f32.mrb[22].mxu1  ;;  %v735_v29 = vadd.f32 %v881_v57, %v734_v24 }
 0x268   :  { %v746_v27 = vadd.f32 %v1141_v25, %v881_v57  ;;  %v737_v28 = vpop.f32.mrb[23].mxu1 }
 0x269   :  { %v738_v30 = vadd.f32 %v881_v57, %v737_v28 }
 0x26a   :  { %v992_v31 = vpack.c.bf16 %v746_v27, %v743_v26 }
 0x26b   :  { %v987_v32 = vpack.c.bf16 %v738_v30, %v735_v29 }
 0x26c   :  { %1007 = vst [vmem:[%s1413_s6 + $0x38] sm:$0xff] %v992_v31  }
 0x26d   :  { %1006 = vst [vmem:[%s1413_s6 + $0x30] sm:$0xff] %v987_v32  }

// kernel: efmlp_forward.4
= control target key start
LH: loop header
LB: loop body
LE: loop exit
PB: predicated region body
PF: predicated region fallthrough
CT: control target
= control target key end

     0   :  { %v1506_v0 = vmov 0   ;;  %v57_v18 = vlaneseq  ;;  %vm155_vm0 = vcmask 64512   ;;  %v1507_v30 = vmov 0.0   ;;  %s1790_s3 = inlined_call_operand.vmem [shape: f32[8,1], index: 3, kind: input, shape index: {}]   ;;  %s1791_s1 = inlined_call_operand.vmem [shape: s32[128,1], index: 1, kind: input, shape index: {}]   ;;  %s1792_s4 = inlined_call_operand.vmem [shape: bf16[128,128], index: 4, kind: input, shape index: {}]   ;;  %s1793_s2 = inlined_call_operand.vmem [shape: f32[8,256], index: 2, kind: input, shape index: {}]   ;;  %s1794_s0 = inlined_call_operand.vmem [shape: bf16[128,128], index: 0, kind: input, shape index: {}]   ;;  %s1795_s5 = inlined_call_operand.vmem [shape: f32[1,128], index: 5, kind: input, shape index: {}]   ;;  %s1796_s6 = inlined_call_operand.vmem [shape: bf16[128,128], index: 6, kind: output, shape index: {0}]   ;;  %s1797_s7 = inlined_call_operand.vmem [shape: f32[1,8,256], index: 7, kind: output, shape index: {1}]  }
   0x1   :  { %1495 = vset.pattern.permute.xlu1 %v1506_v0  ;;  %1494 = vset.pattern.permute.xlu0 %v1506_v0  ;;  %v26_v1 = vld [vmem:[%s1790_s3] sm:$0xff]  ;;  %v42_v2 = vld [vmem:[%s1791_s1 + $0x8] sm:$0xff]  ;;  %v43_v3 = vld [vmem:[%s1791_s1 + $0x10] sm:$0xff] }
   0x2   :  { %31 = vperm.xlu0 %1494, %v26_v1   ;;  %63 = vperm.xlu1 %1495, %v42_v2   ;;  %v41_v4 = vld [vmem:[%s1791_s1] sm:$0xff]  ;;  %v44_v6 = vld [vmem:[%s1791_s1 + $0x18] sm:$0xff]  ;;  %v47_v7 = vld [vmem:[%s1791_s1 + $0x30] sm:$0xff]  ;;  %v1607_v24 = vand.u32 127, %v57_v18 }
   0x3   :  { %v45_v5 = vld [vmem:[%s1791_s1 + $0x20] sm:$0xff]  ;;  %v46_v8 = vld [vmem:[%s1791_s1 + $0x28] sm:$0xff]  ;;  %v48_v10 = vld [vmem:[%s1791_s1 + $0x38] sm:$0xff] }
   0x4   :  { %v49_v9 = vld [vmem:[%s1791_s1 + $0x40] sm:$0xff]  ;;  %v51_v11 = vld [vmem:[%s1791_s1 + $0x50] sm:$0xff]  ;;  %v50_v12 = vld [vmem:[%s1791_s1 + $0x48] sm:$0xff] }
   0x5   :  { %v53_v13 = vld [vmem:[%s1791_s1 + $0x60] sm:$0xff]  ;;  %v52_v14 = vld [vmem:[%s1791_s1 + $0x58] sm:$0xff]  ;;  %v55_v15 = vld [vmem:[%s1791_s1 + $0x70] sm:$0xff] }
   0x6   :  { %66 = vperm.xlu1 %1495, %v43_v3   ;;  %60 = vperm.xlu0 %1494, %v41_v4   ;;  %v54_v16 = vld [vmem:[%s1791_s1 + $0x68] sm:$0xff]  ;;  %v56_v17 = vld [vmem:[%s1791_s1 + $0x78] sm:$0xff]  ;;  %v27_v19 = vld [vmem:[%s1793_s2] sm:$0xff] }
   0x7   :  { %v28_v21 = vld [vmem:[%s1793_s2 + $0x8] sm:$0xff]  ;;  %v1496_v45 = vld [vmem:[%s1792_s4] sm:$0xff]   ;;  %v1498_v52 = vld [vmem:[%s1792_s4 + $0x10] sm:$0xff]  }
   0x8   :  { %v1497_v48 = vld [vmem:[%s1792_s4 + $0x8] sm:$0xff]   ;;  %v1499_v55 = vld [vmem:[%s1792_s4 + $0x18] sm:$0xff]   ;;  %v1500_v58 = vld [vmem:[%s1792_s4 + $0x20] sm:$0xff]  }
   0xa   :  { %72 = vperm.xlu1 %1495, %v45_v5   ;;  %69 = vperm.xlu0 %1494, %v44_v6   ;;  %v1501_v5 = vld [vmem:[%s1792_s4 + $0x28] sm:$0xff]   ;;  %v1502_v6 = vld [vmem:[%s1792_s4 + $0x30] sm:$0xff]  }
   0xe   :  { %78 = vperm.xlu1 %1495, %v47_v7   ;;  %75 = vperm.xlu0 %1494, %v46_v8   ;;  %v1503_v7 = vld [vmem:[%s1792_s4 + $0x38] sm:$0xff]   ;;  %v1119_v8 = vld [vmem:[%s1794_s0] sm:$0xff]  }
  0x12   :  { %84 = vperm.xlu1 %1495, %v49_v9   ;;  %81 = vperm.xlu0 %1494, %v48_v10   ;;  %v1121_v9 = vunpack.c.h.bf16 %v1119_v8  ;;  %v1120_v10 = vunpack.c.l.bf16 %v1119_v8 }
  0x16   :  { %90 = vperm.xlu1 %1495, %v51_v11   ;;  %87 = vperm.xlu0 %1494, %v50_v12   ;;  %v1190_v11 = vld [vmem:[%s1794_s0 + $0x8] sm:$0xff]  }
  0x17   :  { %v1124_v18 = vunpack.c.l.bf16 %v1190_v11 }
  0x1a   :  { %96 = vperm.xlu1 %1495, %v53_v13   ;;  %93 = vperm.xlu0 %1494, %v52_v14  }
  0x1e   :  { %102 = vperm.xlu1 %1495, %v55_v15   ;;  %99 = vperm.xlu0 %1494, %v54_v16   ;;  %v1125_v15 = vunpack.c.h.bf16 %v1190_v11  ;;  %v1195_v11 = vld [vmem:[%s1794_s0 + $0x30] sm:$0xff]  }
  0x22   :  { %105 = vperm.xlu0 %1494, %v56_v17  }
  0x81   :  { %v32_v20 = vpop.permute.xlu0 %31  ;;  %v64_v22 = vpop.permute.xlu1 %63 }
  0x82   :  { %v34_v23 = vmul.f32 %v32_v20, %v27_v19  ;;  %v35_v25 = vmul.f32 %v32_v20, %v28_v21  ;;  %vm108_vm1 = vcmp.eq.s32.totalorder %v64_v22, %v1607_v24  ;;  %v1191_v19 = vld [vmem:[%s1794_s0 + $0x10] sm:$0xff]  }
  0x83   :  { %v1030_v33 = vsel %vm108_vm1, 1.0, %v1507_v30 }
  0x84   :  { %v36_v26 = vmul.f32 %v34_v23, %v34_v23 }
  0x85   :  { %v61_v27 = vpop.permute.xlu0 %60  ;;  %v67_v29 = vpop.permute.xlu1 %66 }
  0x86   :  { %v37_v28 = vsub.f32 %v35_v25, %v36_v26  ;;  %vm107_vm2 = vcmp.eq.s32.totalorder %v61_v27, %v1607_v24  ;;  %vm109_vm3 = vcmp.eq.s32.totalorder %v67_v29, %v1607_v24  ;;  %v1129_v27 = vunpack.c.h.bf16 %v1191_v19 }
  0x87   :  { %v1029_v31 = vsel %vm107_vm2, 1.0, %v1507_v30  ;;  %v1031_v36 = vsel %vm109_vm3, 1.0, %v1507_v30 }
  0x88   :  { %v38_v32 = vmax.f32 %v37_v28, 0.0  ;;  %831 = vxpose.xlu1.b32.start [1/16] (narrow) %v1029_v31, 8  ;;  %1290 = vmatprep.mubr.msk.f32.mxu0 %vm155_vm0, %v1029_v31 }
  0x89   :  { %1316 = vmatprep.mubr.msk.f32.mxu1 %vm155_vm0, %v1029_v31  ;;  %v70_v35 = vpop.permute.xlu0 %69  ;;  %v73_v37 = vpop.permute.xlu1 %72 }
  0x8a   :  { %v39_v34 = vadd.f32 1e-05, %v38_v32  ;;  %vm110_vm4 = vcmp.eq.s32.totalorder %v70_v35, %v1607_v24  ;;  %vm111_vm5 = vcmp.eq.s32.totalorder %v73_v37, %v1607_v24  ;;  %v1128_v32 = vunpack.c.l.bf16 %v1191_v19 }
  0x8b   :  { %v1032_v39 = vsel %vm110_vm4, 1.0, %v1507_v30  ;;  %v1033_v41 = vsel %vm111_vm5, 1.0, %v1507_v30 }
  0x8c   :  { %1504 = vrsqrt.f32 %v39_v34  ;;  %832 = vxpose.xlu1.b32.cont [2/16] (narrow) %v1030_v33, 8 }
  0x8d   :  { %v76_v38 = vpop.permute.xlu0 %75  ;;  %v79_v40 = vpop.permute.xlu1 %78 }
  0x8e   :  { %vm112_vm6 = vcmp.eq.s32.totalorder %v76_v38, %v1607_v24  ;;  %vm113_vm7 = vcmp.eq.s32.totalorder %v79_v40, %v1607_v24 }
  0x8f   :  { %v1034_v47 = vsel %vm112_vm6, 1.0, %v1507_v30  ;;  %v1035_v50 = vsel %vm113_vm7, 1.0, %v1507_v30 }
  0x90   :  { %833 = vxpose.xlu1.b32.cont [3/16] (narrow) %v1031_v36, 8 }
  0x91   :  { %v82_v43 = vpop.permute.xlu0 %81  ;;  %v85_v46 = vpop.permute.xlu1 %84 }
  0x92   :  { %vm114_vm8 = vcmp.eq.s32.totalorder %v82_v43, %v1607_v24  ;;  %vm115_vm9 = vcmp.eq.s32.totalorder %v85_v46, %v1607_v24 }
  0x93   :  { %v1036_v54 = vsel %vm114_vm8, 1.0, %v1507_v30  ;;  %v1037_v56 = vsel %vm115_vm9, 1.0, %v1507_v30 }
  0x94   :  { %834 = vxpose.xlu1.b32.cont [4/16] (narrow) %v1032_v39, 8 }
  0x95   :  { %v88_v49 = vpop.permute.xlu0 %87  ;;  %v91_v51 = vpop.permute.xlu1 %90 }
  0x96   :  { %v1505_v42 = vpop.eup %1504  ;;  %vm116_vm10 = vcmp.eq.s32.totalorder %v88_v49, %v1607_v24  ;;  %vm117_vm11 = vcmp.eq.s32.totalorder %v91_v51, %v1607_v24 }
  0x97   :  { %1288 = vmatprep.subr.mxu0 %v1505_v42  ;;  %v349_v44 = vmul.f32 %v1505_v42, %v34_v23  ;;  %v1038_v59 = vsel %vm116_vm10, 1.0, %v1507_v30  ;;  %v1039_v61 = vsel %vm117_vm11, 1.0, %v1507_v30 }
  0x98   :  { %1289 = vmatpush3.msra.mxu0 %v1505_v42  ;;  %835 = vxpose.xlu1.b32.cont [5/16] (narrow) %v1033_v41, 8 }
  0x99   :  { %1314 = vmatprep.subr.mxu1 %v349_v44  ;;  %1291 = vmatmul.mubr.msk.f32.vlgmr.msra.gmra.mrb[0].mxu0 %vm155_vm0, %v1030_v33  ;;  %v94_v53 = vpop.permute.xlu0 %93  ;;  %v97_v57 = vpop.permute.xlu1 %96 }
  0x9a   :  { %1293 = vmatprep.mubr.msk.f32.mxu0 %vm155_vm0, %v1031_v36  ;;  %1315 = vmatpush3.msra.mxu1 %v349_v44  ;;  %vm118_vm12 = vcmp.eq.s32.totalorder %v94_v53, %v1607_v24  ;;  %vm119_vm13 = vcmp.eq.s32.totalorder %v97_v57, %v1607_v24 }
  0x9b   :  { %1317 = vmatmul.mubr.msk.f32.vlgmr.msra.gmra.mrb[0].mxu1 %vm155_vm0, %v1030_v33  ;;  %1340 = vmatprep.subr.bf16.mxu0 %v1496_v45  ;;  %v1040_v63 = vsel %vm118_vm12, 1.0, %v1507_v30  ;;  %v1041_v0 = vsel %vm119_vm13, 1.0, %v1507_v30  ;;  %v1192_v33 = vld [vmem:[%s1794_s0 + $0x18] sm:$0xff]  }
  0x9c   :  { %1319 = vmatprep.mubr.msk.f32.mxu1 %vm155_vm0, %v1031_v36  ;;  %836 = vxpose.xlu1.b32.cont [6/16] (narrow) %v1034_v47, 8  ;;  %v1133_v42 = vunpack.c.h.bf16 %v1192_v33  ;;  %v1132_v46 = vunpack.c.l.bf16 %v1192_v33 }
  0x9d   :  { %1294 = vmatmul.mubr.msk.f32.gmra.mrb[2].mxu0 %vm155_vm0, %v1032_v39  ;;  %v100_v60 = vpop.permute.xlu0 %99  ;;  %v103_v62 = vpop.permute.xlu1 %102 }
  0x9e   :  { %1296 = vmatprep.mubr.msk.f32.mxu0 %vm155_vm0, %v1033_v41  ;;  %1341 = vmatpush3.bf16.msra.mxu0 %v1496_v45  ;;  %vm120_vm14 = vcmp.eq.s32.totalorder %v100_v60, %v1607_v24  ;;  %vm121_vm15 = vcmp.eq.s32.totalorder %v103_v62, %v1607_v24 }
  0x9f   :  { %1320 = vmatmul.mubr.msk.f32.gmra.mrb[2].mxu1 %vm155_vm0, %v1032_v39  ;;  %1342 = vmatprep.subr.bf16.mxu0 %v1497_v48  ;;  %v1042_v2 = vsel %vm120_vm14, 1.0, %v1507_v30  ;;  %v1043_v3 = vsel %vm121_vm15, 1.0, %v1507_v30 }
  0xa0   :  { %1322 = vmatprep.mubr.msk.f32.mxu1 %vm155_vm0, %v1033_v41  ;;  %837 = vxpose.xlu1.b32.cont [7/16] (narrow) %v1035_v50, 8 }
  0xa1   :  { %1297 = vmatmul.mubr.msk.f32.gmra.mrb[4].mxu0 %vm155_vm0, %v1034_v47  ;;  %v106_v1 = vpop.permute.xlu0 %105 }
  0xa2   :  { %1299 = vmatprep.mubr.msk.f32.mxu0 %vm155_vm0, %v1035_v50  ;;  %1343 = vmatpush3.bf16.msra.mxu0 %v1497_v48  ;;  %vm122_vm1 = vcmp.eq.s32.totalorder %v106_v1, %v1607_v24 }
  0xa3   :  { %1323 = vmatmul.mubr.msk.f32.gmra.mrb[4].mxu1 %vm155_vm0, %v1034_v47  ;;  %1344 = vmatprep.subr.bf16.mxu0 %v1498_v52  ;;  %v1044_v4 = vsel %vm122_vm1, 1.0, %v1507_v30  ;;  %v1193_v47 = vld [vmem:[%s1794_s0 + $0x20] sm:$0xff]  }
  0xa4   :  { %1325 = vmatprep.mubr.msk.f32.mxu1 %vm155_vm0, %v1035_v50  ;;  %838 = vxpose.xlu1.b32.cont [8/16] (narrow) %v1036_v54, 8  ;;  %v1136_v60 = vunpack.c.l.bf16 %v1193_v47 }
  0xa5   :  { %1300 = vmatmul.mubr.msk.f32.gmra.mrb[6].mxu0 %vm155_vm0, %v1036_v54 }
  0xa6   :  { %1302 = vmatprep.mubr.msk.f32.mxu0 %vm155_vm0, %v1037_v56  ;;  %1345 = vmatpush3.bf16.msra.mxu0 %v1498_v52 }
  0xa7   :  { %1326 = vmatmul.mubr.msk.f32.gmra.mrb[6].mxu1 %vm155_vm0, %v1036_v54  ;;  %1346 = vmatprep.subr.bf16.mxu0 %v1499_v55 }
  0xa8   :  { %839 = vxpose.xlu1.b32.cont [9/16] (narrow) %v1037_v56, 8  ;;  %1328 = vmatprep.mubr.msk.f32.mxu1 %vm155_vm0, %v1037_v56  ;;  %v1137_v56 = vunpack.c.h.bf16 %v1193_v47 }
  0xa9   :  { %1303 = vmatmul.mubr.msk.f32.gmra.mrb[8].mxu0 %vm155_vm0, %v1038_v59 }
  0xaa   :  { %1305 = vmatprep.mubr.msk.f32.mxu0 %vm155_vm0, %v1039_v61  ;;  %1347 = vmatpush3.bf16.msra.mxu0 %v1499_v55 }
  0xab   :  { %1329 = vmatmul.mubr.msk.f32.gmra.mrb[8].mxu1 %vm155_vm0, %v1038_v59  ;;  %1348 = vmatprep.subr.bf16.mxu0 %v1500_v58 }
  0xac   :  { %840 = vxpose.xlu1.b32.cont [10/16] (narrow) %v1038_v59, 8  ;;  %1331 = vmatprep.mubr.msk.f32.mxu1 %vm155_vm0, %v1039_v61 }
  0xad   :  { %1306 = vmatmul.mubr.msk.f32.gmra.mrb[10].mxu0 %vm155_vm0, %v1040_v63 }
  0xae   :  { %1308 = vmatprep.mubr.msk.f32.mxu0 %vm155_vm0, %v1041_v0  ;;  %1349 = vmatpush3.bf16.msra.mxu0 %v1500_v58 }
  0xaf   :  { %1332 = vmatmul.mubr.msk.f32.gmra.mrb[10].mxu1 %vm155_vm0, %v1040_v63  ;;  %1350 = vmatprep.subr.bf16.mxu0 %v1501_v5 }
  0xb0   :  { %841 = vxpose.xlu1.b32.cont [11/16] (narrow) %v1039_v61, 8  ;;  %1334 = vmatprep.mubr.msk.f32.mxu1 %vm155_vm0, %v1041_v0  ;;  %v1194_v61 = vld [vmem:[%s1794_s0 + $0x28] sm:$0xff]  }
  0xb1   :  { %1309 = vmatmul.mubr.msk.f32.gmra.mrb[12].mxu0 %vm155_vm0, %v1042_v2 }
  0xb2   :  { %1311 = vmatprep.mubr.msk.f32.mxu0 %vm155_vm0, %v1043_v3  ;;  %1351 = vmatpush3.bf16.msra.mxu0 %v1501_v5 }
  0xb3   :  { %1335 = vmatmul.mubr.msk.f32.gmra.mrb[12].mxu1 %vm155_vm0, %v1042_v2  ;;  %1352 = vmatprep.subr.bf16.mxu0 %v1502_v6 }
  0xb4   :  { %842 = vxpose.xlu1.b32.cont [12/16] (narrow) %v1040_v63, 8  ;;  %1337 = vmatprep.mubr.msk.f32.mxu1 %vm155_vm0, %v1043_v3 }
  0xb5   :  { %1312 = vmatmul.mubr.msk.f32.gmra.mrb[14].mxu0 %vm155_vm0, %v1044_v4 }
  0xb6   :  { %1353 = vmatpush3.bf16.msra.mxu0 %v1502_v6  ;;  %v1141_v6 = vunpack.c.h.bf16 %v1194_v61 }
  0xb7   :  { %1338 = vmatmul.mubr.msk.f32.gmra.mrb[14].mxu1 %vm155_vm0, %v1044_v4  ;;  %1354 = vmatprep.subr.bf16.mxu0 %v1503_v7  ;;  %vm1509_vm0 = vmmov 0  }
  0xb8   :  { %843 = vxpose.xlu1.b32.cont [13/16] (narrow) %v1041_v0, 8  ;;  %1404 = vmatprep.mubr.msk.f32.mxu1 %vm1509_vm0, %v1507_v30 }
  0xba   :  { %1355 = vmatpush3.bf16.msra.mxu0 %v1503_v7 }
  0xbc   :  { %844 = vxpose.xlu1.b32.cont [14/16] (narrow) %v1042_v2, 8 }
  0xc0   :  { %845 = vxpose.xlu1.b32.cont [15/16] (narrow) %v1043_v3, 8 }
  0xc4   :  { %846 = vxpose.xlu1.b32.end [16/16] (narrow) %v1044_v4, 8 }
 0x16c   :  { %v1292_v12 = vpop.f32.mrb[0].mxu0 }
 0x16d   :  { %v528_v13 = vmul.f32 %v1292_v12, %v1121_v9  ;;  %v270_v14 = vpop.f32.mrb[1].mxu0 }
 0x16e   :  { %v527_v16 = vmul.f32 %v1120_v10, %v270_v14  ;;  %v1318_v17 = vpop.f32.mrb[0].mxu1  ;;  %v1140_v10 = vunpack.c.l.bf16 %v1194_v61 }
 0x16f   :  { %v544_v20 = vsub.f32 %v528_v13, %v1318_v17  ;;  %v416_v21 = vpop.f32.mrb[1].mxu1 }
 0x170   :  { %v543_v22 = vsub.f32 %v527_v16, %v416_v21  ;;  %v1295_v23 = vpop.f32.mrb[2].mxu0 }
 0x171   :  { %v560_v24 = vmax.f32 %v544_v20, 0.0  ;;  %v530_v25 = vmul.f32 %v1295_v23, %v1125_v15  ;;  %v280_v26 = vpop.f32.mrb[3].mxu0  ;;  %v1145_v20 = vunpack.c.h.bf16 %v1195_v11 }
 0x172   :  { %v559_v28 = vmax.f32 %v543_v22, 0.0  ;;  %v529_v29 = vmul.f32 %v1124_v18, %v280_v26  ;;  %v1321_v31 = vpop.f32.mrb[2].mxu1 }
 0x173   :  { %v546_v34 = vsub.f32 %v530_v25, %v1321_v31  ;;  %v426_v35 = vpop.f32.mrb[3].mxu1  ;;  %v1196_v25 = vld [vmem:[%s1794_s0 + $0x38] sm:$0xff]  }
 0x174   :  { %v575_v36 = vpack.c.bf16 %v560_v24, %v559_v28  ;;  %v545_v37 = vsub.f32 %v529_v29, %v426_v35  ;;  %v1298_v38 = vpop.f32.mrb[4].mxu0  ;;  %v1144_v24 = vunpack.c.l.bf16 %v1195_v11  ;;  %v1149_v35 = vunpack.c.h.bf16 %v1196_v25 }
 0x175   :  { %v562_v39 = vmax.f32 %v546_v34, 0.0  ;;  %v532_v40 = vmul.f32 %v1298_v38, %v1129_v27  ;;  %v290_v41 = vpop.f32.mrb[5].mxu0 }
 0x176   :  { %v561_v43 = vmax.f32 %v545_v37, 0.0  ;;  %v531_v44 = vmul.f32 %v1128_v32, %v290_v41  ;;  %v1324_v45 = vpop.f32.mrb[4].mxu1  ;;  %1356 = vmatprep.mubr.bf16.mxu0 %v575_v36 }
 0x177   :  { %v548_v48 = vsub.f32 %v532_v40, %v1324_v45  ;;  %v436_v49 = vpop.f32.mrb[5].mxu1 }
 0x178   :  { %v576_v50 = vpack.c.bf16 %v562_v39, %v561_v43  ;;  %v547_v51 = vsub.f32 %v531_v44, %v436_v49  ;;  %v1301_v52 = vpop.f32.mrb[6].mxu0  ;;  %v1148_v39 = vunpack.c.l.bf16 %v1196_v25 }
 0x179   :  { %v564_v53 = vmax.f32 %v548_v48, 0.0  ;;  %v534_v54 = vmul.f32 %v1301_v52, %v1133_v42  ;;  %v300_v55 = vpop.f32.mrb[7].mxu0 }
 0x17a   :  { %v563_v57 = vmax.f32 %v547_v51, 0.0  ;;  %v533_v58 = vmul.f32 %v1132_v46, %v300_v55  ;;  %v1327_v59 = vpop.f32.mrb[6].mxu1  ;;  %1357 = vmatmul.mubr.bf16.vlgmr.msra.gmra.mrb[16].mxu0 %v576_v50 }
 0x17b   :  { %v550_v62 = vsub.f32 %v534_v54, %v1327_v59  ;;  %v446_v63 = vpop.f32.mrb[7].mxu1  ;;  %v1728_v59 = vld [vmem:[%s1795_s5] ss:$0 sm:$0xff] }
 0x17c   :  { %v577_v0 = vpack.c.bf16 %v564_v53, %v563_v57  ;;  %v549_v1 = vsub.f32 %v533_v58, %v446_v63  ;;  %v1304_v2 = vpop.f32.mrb[8].mxu0  ;;  %v1508_v58 = vmov 0.0|0.0  }
 0x17d   :  { %v566_v3 = vmax.f32 %v550_v62, 0.0  ;;  %v536_v4 = vmul.f32 %v1304_v2, %v1137_v56  ;;  %v310_v5 = vpop.f32.mrb[9].mxu0  ;;  %1442 = vmatprep.subr.bf16.mxu1 %v1508_v58  ;;  %1466 = vmatprep.subr.bf16.mxu0 %v1508_v58 }
 0x17e   :  { %v565_v7 = vmax.f32 %v549_v1, 0.0  ;;  %v535_v8 = vmul.f32 %v1136_v60, %v310_v5  ;;  %v1330_v9 = vpop.f32.mrb[8].mxu1  ;;  %1360 = vmatprep.mubr.bf16.mxu0 %v577_v0 }
 0x17f   :  { %v552_v12 = vsub.f32 %v536_v4, %v1330_v9  ;;  %v456_v13 = vpop.f32.mrb[9].mxu1 }
 0x180   :  { %v578_v14 = vpack.c.bf16 %v566_v3, %v565_v7  ;;  %v551_v15 = vsub.f32 %v535_v8, %v456_v13  ;;  %v1307_v16 = vpop.f32.mrb[10].mxu0 }
 0x181   :  { %v568_v17 = vmax.f32 %v552_v12, 0.0  ;;  %v538_v18 = vmul.f32 %v1307_v16, %v1141_v6  ;;  %v320_v19 = vpop.f32.mrb[11].mxu0 }
 0x182   :  { %v567_v21 = vmax.f32 %v551_v15, 0.0  ;;  %v537_v22 = vmul.f32 %v1140_v10, %v320_v19  ;;  %v1333_v23 = vpop.f32.mrb[10].mxu1  ;;  %1361 = vmatmul.mubr.bf16.gmra.mrb[20].mxu0 %v578_v14 }
 0x183   :  { %v554_v26 = vsub.f32 %v538_v18, %v1333_v23  ;;  %v466_v27 = vpop.f32.mrb[11].mxu1 }
 0x184   :  { %v579_v28 = vpack.c.bf16 %v568_v17, %v567_v21  ;;  %v553_v29 = vsub.f32 %v537_v22, %v466_v27  ;;  %v1310_v31 = vpop.f32.mrb[12].mxu0 }
 0x185   :  { %v570_v32 = vmax.f32 %v554_v26, 0.0  ;;  %v540_v33 = vmul.f32 %v1310_v31, %v1145_v20  ;;  %v330_v34 = vpop.f32.mrb[13].mxu0 }
 0x186   :  { %v569_v36 = vmax.f32 %v553_v29, 0.0  ;;  %v539_v37 = vmul.f32 %v1144_v24, %v330_v34  ;;  %v1336_v38 = vpop.f32.mrb[12].mxu1  ;;  %1364 = vmatprep.mubr.bf16.mxu0 %v579_v28 }
 0x187   :  { %v556_v40 = vsub.f32 %v540_v33, %v1336_v38  ;;  %v476_v41 = vpop.f32.mrb[13].mxu1 }
 0x188   :  { %v580_v42 = vpack.c.bf16 %v570_v32, %v569_v36  ;;  %v555_v43 = vsub.f32 %v539_v37, %v476_v41  ;;  %v1313_v44 = vpop.f32.mrb[14].mxu0 }
 0x189   :  { %v572_v45 = vmax.f32 %v556_v40, 0.0  ;;  %v542_v46 = vmul.f32 %v1313_v44, %v1149_v35  ;;  %v340_v47 = vpop.f32.mrb[15].mxu0 }
 0x18a   :  { %v571_v48 = vmax.f32 %v555_v43, 0.0  ;;  %v541_v49 = vmul.f32 %v1148_v39, %v340_v47  ;;  %v1339_v50 = vpop.f32.mrb[14].mxu1  ;;  %1365 = vmatmul.mubr.bf16.gmra.mrb[24].mxu0 %v580_v42 }
 0x18b   :  { %v558_v51 = vsub.f32 %v542_v46, %v1339_v50  ;;  %v486_v52 = vpop.f32.mrb[15].mxu1 }
 0x18c   :  { %v581_v53 = vpack.c.bf16 %v572_v45, %v571_v48  ;;  %v557_v54 = vsub.f32 %v541_v49, %v486_v52 }
 0x18d   :  { %v574_v55 = vmax.f32 %v558_v51, 0.0 }
 0x18e   :  { %v573_v56 = vmax.f32 %v557_v54, 0.0  ;;  %1368 = vmatprep.mubr.bf16.mxu0 %v581_v53 }
 0x190   :  { %v582_v57 = vpack.c.bf16 %v574_v55, %v573_v56 }
 0x192   :  { %1369 = vmatmul.mubr.bf16.gmra.mrb[28].mxu0 %v582_v57 }
 0x193   :  { %1439 = vmatprep.mubr.msk.f32.mxu0 %vm1509_vm0, %v1507_v30 }
 0x24d   :  { %v1358_v60 = vpop.f32.mrb[16].mxu0 }
 0x24e   :  { %v697_v61 = vadd.f32 %v1358_v60, %v1728_v59  ;;  %v688_v62 = vpop.f32.mrb[17].mxu0 }
 0x24f   :  { %v689_v63 = vadd.f32 %v1728_v59, %v688_v62  ;;  %v1359_v0 = vpop.f32.mrb[18].mxu0 }
 0x250   :  { %v700_v1 = vadd.f32 %v1359_v0, %v1728_v59  ;;  %v691_v2 = vpop.f32.mrb[19].mxu0  ;;  %v936_v4 = vmul.f32 %v697_v61, %v697_v61 }
 0x251   :  { %v692_v3 = vadd.f32 %v1728_v59, %v691_v2  ;;  %v934_v6 = vmul.f32 %v689_v63, %v689_v63 }
 0x252   :  { %v1158_v5 = vpack.c.bf16 %v700_v1, %v697_v61  ;;  %v937_v30 = vmul.f32 %v700_v1, %v700_v1  ;;  %v847_v61 = vpop.trf.xlu1 }
 0x253   :  { %v1153_v7 = vpack.c.bf16 %v692_v3, %v689_v63  ;;  %v935_v8 = vmul.f32 %v692_v3, %v692_v3 }
 0x254   :  { %1197 = vst [vmem:[%s1796_s6 + $0x8] sm:$0xff] %v1158_v5   ;;  %v1470_v9 = vpack.c.bf16 %v937_v30, %v936_v4 }
 0x255   :  { %1154 = vst [vmem:[%s1796_s6] sm:$0xff] %v1153_v7   ;;  %v1467_v10 = vpack.c.bf16 %v935_v8, %v934_v6  ;;  %v1362_v11 = vpop.f32.mrb[20].mxu0  ;;  %1444 = vmatpush3.bf16.msra.mxu1 %v1153_v7 }
 0x256   :  { %v713_v12 = vadd.f32 %v1362_v11, %v1728_v59  ;;  %v704_v13 = vpop.f32.mrb[21].mxu0  ;;  %1445 = vmatprep.subr.bf16.mxu1 %v1508_v58 }
 0x257   :  { %v705_v14 = vadd.f32 %v1728_v59, %v704_v13  ;;  %v1363_v15 = vpop.f32.mrb[22].mxu0  ;;  %1468 = vmatpush3.bf16.msra.mxu0 %v1467_v10 }
 0x258   :  { %v716_v16 = vadd.f32 %v1363_v15, %v1728_v59  ;;  %v707_v17 = vpop.f32.mrb[23].mxu0  ;;  %1469 = vmatprep.subr.bf16.mxu0 %v1508_v58  ;;  %v940_v19 = vmul.f32 %v713_v12, %v713_v12 }
 0x259   :  { %v708_v18 = vadd.f32 %v1728_v59, %v707_v17  ;;  %1447 = vmatpush3.bf16.msra.mxu1 %v1158_v5  ;;  %v938_v22 = vmul.f32 %v705_v14, %v705_v14 }
 0x25a   :  { %v1168_v20 = vpack.c.bf16 %v716_v16, %v713_v12  ;;  %v941_v21 = vmul.f32 %v716_v16, %v716_v16  ;;  %1448 = vmatprep.subr.bf16.mxu1 %v1508_v58 }
 0x25b   :  { %v1163_v23 = vpack.c.bf16 %v708_v18, %v705_v14  ;;  %v939_v24 = vmul.f32 %v708_v18, %v708_v18  ;;  %1471 = vmatpush3.bf16.msra.mxu0 %v1470_v9 }
 0x25c   :  { %1199 = vst [vmem:[%s1796_s6 + $0x18] sm:$0xff] %v1168_v20   ;;  %v1476_v25 = vpack.c.bf16 %v941_v21, %v940_v19  ;;  %1472 = vmatprep.subr.bf16.mxu0 %v1508_v58 }
 0x25d   :  { %1198 = vst [vmem:[%s1796_s6 + $0x10] sm:$0xff] %v1163_v23   ;;  %v1473_v26 = vpack.c.bf16 %v939_v24, %v938_v22  ;;  %v1366_v27 = vpop.f32.mrb[24].mxu0  ;;  %1450 = vmatpush3.bf16.msra.mxu1 %v1163_v23 }
 0x25e   :  { %v729_v28 = vadd.f32 %v1366_v27, %v1728_v59  ;;  %v720_v29 = vpop.f32.mrb[25].mxu0  ;;  %1451 = vmatprep.subr.bf16.mxu1 %v1508_v58 }
 0x25f   :  { %v721_v31 = vadd.f32 %v1728_v59, %v720_v29  ;;  %v1367_v32 = vpop.f32.mrb[26].mxu0  ;;  %1474 = vmatpush3.bf16.msra.mxu0 %v1473_v26 }
 0x260   :  { %v732_v33 = vadd.f32 %v1367_v32, %v1728_v59  ;;  %v723_v34 = vpop.f32.mrb[27].mxu0  ;;  %1475 = vmatprep.subr.bf16.mxu0 %v1508_v58  ;;  %v944_v36 = vmul.f32 %v729_v28, %v729_v28 }
 0x261   :  { %v724_v35 = vadd.f32 %v1728_v59, %v723_v34  ;;  %1453 = vmatpush3.bf16.msra.mxu1 %v1168_v20  ;;  %v942_v39 = vmul.f32 %v721_v31, %v721_v31 }
 0x262   :  { %v1178_v37 = vpack.c.bf16 %v732_v33, %v729_v28  ;;  %v945_v38 = vmul.f32 %v732_v33, %v732_v33  ;;  %1454 = vmatprep.subr.bf16.mxu1 %v1508_v58 }
 0x263   :  { %v1173_v40 = vpack.c.bf16 %v724_v35, %v721_v31  ;;  %v943_v41 = vmul.f32 %v724_v35, %v724_v35  ;;  %1477 = vmatpush3.bf16.msra.mxu0 %v1476_v25 }
 0x264   :  { %1201 = vst [vmem:[%s1796_s6 + $0x28] sm:$0xff] %v1178_v37   ;;  %v1482_v42 = vpack.c.bf16 %v945_v38, %v944_v36  ;;  %1478 = vmatprep.subr.bf16.mxu0 %v1508_v58 }
 0x265   :  { %1200 = vst [vmem:[%s1796_s6 + $0x20] sm:$0xff] %v1173_v40   ;;  %v1479_v43 = vpack.c.bf16 %v943_v41, %v942_v39  ;;  %v1370_v44 = vpop.f32.mrb[28].mxu0  ;;  %1456 = vmatpush3.bf16.msra.mxu1 %v1173_v40 }
 0x266   :  { %v745_v45 = vadd.f32 %v1370_v44, %v1728_v59  ;;  %v736_v46 = vpop.f32.mrb[29].mxu0  ;;  %1457 = vmatprep.subr.bf16.mxu1 %v1508_v58 }
 0x267   :  { %v737_v47 = vadd.f32 %v1728_v59, %v736_v46  ;;  %v1371_v48 = vpop.f32.mrb[30].mxu0  ;;  %1480 = vmatpush3.bf16.msra.mxu0 %v1479_v43 }
 0x268   :  { %v748_v49 = vadd.f32 %v1371_v48, %v1728_v59  ;;  %v739_v50 = vpop.f32.mrb[31].mxu0  ;;  %1481 = vmatprep.subr.bf16.mxu0 %v1508_v58  ;;  %v948_v52 = vmul.f32 %v745_v45, %v745_v45 }
 0x269   :  { %v740_v51 = vadd.f32 %v1728_v59, %v739_v50  ;;  %1459 = vmatpush3.bf16.msra.mxu1 %v1178_v37  ;;  %v946_v55 = vmul.f32 %v737_v47, %v737_v47 }
 0x26a   :  { %v1188_v53 = vpack.c.bf16 %v748_v49, %v745_v45  ;;  %v949_v54 = vmul.f32 %v748_v49, %v748_v49  ;;  %1460 = vmatprep.subr.bf16.mxu1 %v1508_v58 }
 0x26b   :  { %v1183_v56 = vpack.c.bf16 %v740_v51, %v737_v47  ;;  %v947_v57 = vmul.f32 %v740_v51, %v740_v51  ;;  %1483 = vmatpush3.bf16.msra.mxu0 %v1482_v42 }
 0x26c   :  { %1203 = vst [vmem:[%s1796_s6 + $0x38] sm:$0xff] %v1188_v53   ;;  %v1488_v60 = vpack.c.bf16 %v949_v54, %v948_v52  ;;  %1484 = vmatprep.subr.bf16.mxu0 %v1508_v58 }
 0x26d   :  { %1202 = vst [vmem:[%s1796_s6 + $0x30] sm:$0xff] %v1183_v56   ;;  %v1485_v59 = vpack.c.bf16 %v947_v57, %v946_v55  ;;  %1462 = vmatpush3.bf16.msra.mxu1 %v1183_v56 }
 0x26e   :  { %1463 = vmatprep.subr.bf16.mxu1 %v1508_v58 }
 0x26f   :  { %1486 = vmatpush3.bf16.msra.mxu0 %v1485_v59 }
 0x270   :  { %1487 = vmatprep.subr.bf16.mxu0 %v1508_v58 }
 0x271   :  { %1465 = vmatpush3.bf16.msra.mxu1 %v1188_v53 }
 0x273   :  { %1489 = vmatpush3.bf16.msra.mxu0 %v1488_v60 }
 0x274   :  { %1405 = vmatmul.mubr.f32.vlgmr.msra.gmra.mrb[16].mxu1 %v847_v61 }
 0x276   :  { %1440 = vmatmul.mubr.f32.vlgmr.msra.gmra.mrb[32].mxu0 %v847_v61 }
 0x347   :  { %v929_v62 = vpop.f32.mrb[16].mxu1 }
 0x348   :  { %933 = vst [vmem:[%s1797_s7] sm:$0xff] %v929_v62  ;;  %v1406_v63 = vpop.f32.mrb[17].mxu1 }
 0x349   :  { %v1016_v0 = vpop.f32.mrb[32].mxu0 }
 0x34a   :  { %1020 = vst [vmem:[%s1797_s7 + $0x8] sm:$0xff] %v1016_v0  ;;  %v1441_v1 = vpop.f32.mrb[33].mxu0 }

</bundles_post_ra>
